<compile_context>
chip_gen: v5e
topology: v5e:2x2
jax: 0.10.0
libtpu: 0.0.40
codegen_flags: <defaults>
</compile_context>

<pallas_src>
import jax
import jax.numpy as jnp
import numpy as np
from jax.experimental import pallas as pl
from jax.experimental.pallas import tpu as pltpu

B = 2      # batch
CIN = 16   # conv input channels (per stereo side)
L = 16     # sequence length
C1, C2, C3, C4 = 64, 128, 256, 256
EPS = 1e-5


# --------------------------------- kernel -----------------------------------

def cnn_kernel(x_ref, w1, w2, w3, w4, vec_ref, wfc_ref, out_ref):
    n = x_ref.shape[0]          # B * 2 * L rows, ordered (batch, side, l)
    nb = n // (2 * L)           # batch size

    # Per-row position within each length-L segment (for conv edge masking).
    pos = jax.lax.broadcasted_iota(jnp.int32, (n, 1), 0) % L
    first = pos == 0
    last = pos == (L - 1)

    def conv_k3(h, w_ref):
        """'same' Conv1d(k=3) over every (b, side) segment, one im2col matmul."""
        # Non-negative roll amounts (n-1 == shift of -1 modulo n).
        h_prev = jnp.where(first, 0.0, pltpu.roll(h, shift=1, axis=0))      # h[l-1]
        h_next = jnp.where(last, 0.0, pltpu.roll(h, shift=n - 1, axis=0))   # h[l+1]
        hcat = jnp.concatenate([h_prev, h, h_next], axis=-1)                # (n, 3*Cin)
        return jnp.dot(hcat, w_ref[...], preferred_element_type=jnp.float32)

    # Packed per-channel vectors: rows = [s1, t1', s2, t2', s3, t3', b4, fcb]
    # (conv bias already folded into the BN shift on the host).
    s1 = vec_ref[0:1, 0:C1]
    t1 = vec_ref[1:2, 0:C1]
    s2 = vec_ref[2:3, 0:C2]
    t2 = vec_ref[3:4, 0:C2]
    s3 = vec_ref[4:5, 0:C3]
    t3 = vec_ref[5:6, 0:C3]
    b4 = vec_ref[6:7, 0:C4]
    fcb = vec_ref[7:8, 0:1]

    h = x_ref[...].astype(jnp.float32)                         # (n, 16)
    h = jnp.maximum(conv_k3(h, w1) * s1 + t1, 0.0)             # (n, 64)
    h = jnp.maximum(conv_k3(h, w2) * s2 + t2, 0.0)             # (n, 128)
    h = jnp.maximum(conv_k3(h, w3) * s3 + t3, 0.0)             # (n, 256)
    h = conv_k3(h, w4) + b4                                    # (n, 256)

    # AdaptiveAvgPool1d(1) + cat(left, right) + Linear(512, 1), fused:
    # wfc_ref[row, c] == fc_weight[side(row)*256 + c] / L.
    prod = h * wfc_ref[...]                                    # (n, 256)   VPU
    per_batch = jnp.sum(prod.reshape(nb, 2 * L, C4), axis=1)   # (B, 256)   XLU
    logits = jnp.sum(per_batch, axis=-1, keepdims=True) + fcb  # (B, 1)
    out_ref[...] = jax.nn.sigmoid(logits)


# -------------------------------- wrapper ------------------------------------

def _pad_row(v, width=256):
    v = v.reshape(1, -1)
    return jnp.pad(v, ((0, 0), (0, width - v.shape[1])))


def cnn_forward(x, params):
    """x: (B, 2, CIN, L) float32 (PyTorch layout). Returns (B, 1)."""
    (w1, b1, s1, t1, w2, b2, s2, t2,
     w3, b3, s3, t3, w4, b4, fcw, fcb) = params

    bsz = x.shape[0]
    n = bsz * 2 * L

    # ---- host-side parameter prep (pure layout plumbing, free at runtime) ----
    def flat(w):                       # (3, Cin, Cout) -> (3*Cin, Cout)
        return w.reshape(-1, w.shape[-1])

    t1p = b1 * s1 + t1                 # fold conv bias into BN shift
    t2p = b2 * s2 + t2
    t3p = b3 * s3 + t3

    vec = jnp.concatenate(
        [_pad_row(s1), _pad_row(t1p), _pad_row(s2), _pad_row(t2p),
         _pad_row(s3), _pad_row(t3p), _pad_row(b4), _pad_row(fcb)],
        axis=0)                        # (8, 256)

    # Per-row FC weight (includes 1/L pooling factor), row order = (b, side, l).
    fcw_rows = fcw[:, 0].reshape(2, C4)                       # [left; right]
    wfc = (jnp.broadcast_to(fcw_rows[None, :, None, :], (bsz, 2, L, C4))
           .reshape(n, C4) / float(L))

    # Input: (B, 2, CIN, L) -> (B*2*L, CIN) with channels on the lane axis.
    xk = jnp.transpose(x, (0, 1, 3, 2)).reshape(n, CIN)

    weights = [flat(w1), flat(w2), flat(w3), flat(w4), vec, wfc]

    def full_spec(shape):
        nd = len(shape)
        return pl.BlockSpec(shape, lambda i, nd=nd: (0,) * nd)

    in_specs = [full_spec((n, CIN))] + [full_spec(tuple(w.shape)) for w in weights]

    return pl.pallas_call(
        cnn_kernel,
        out_shape=jax.ShapeDtypeStruct((bsz, 1), jnp.float32),
        grid_spec=pltpu.PrefetchScalarGridSpec(
            num_scalar_prefetch=0,
            grid=(1,),
            in_specs=in_specs,
            out_specs=full_spec((bsz, 1)),
        ),
        compiler_params=pltpu.CompilerParams(
            dimension_semantics=("arbitrary",),
            vmem_limit_bytes=32 * 1024 * 1024,
        ),
    )(xk, *weights)


# ------------------------- deterministic parameters --------------------------

def init_params(key):
    keys = jax.random.split(key, 9)

    def conv(k, cin, cout):
        kw, kb = jax.random.split(k)
        bound = 1.0 / np.sqrt(cin * 3)
        w = jax.random.uniform(kw, (3, cin, cout), jnp.float32, -bound, bound)
        b = jax.random.uniform(kb, (1, cout), jnp.float32, -bound, bound)
        return w, b

    def bn(k, c):
        k1, k2, k3, k4 = jax.random.split(k, 4)
        gamma = jax.random.uniform(k1, (1, c), jnp.float32, 0.5, 1.5)
        beta = jax.random.uniform(k2, (1, c), jnp.float32, -0.5, 0.5)
        mean = jax.random.uniform(k3, (1, c), jnp.float32, -0.5, 0.5)
        var = jax.random.uniform(k4, (1, c), jnp.float32, 0.5, 1.5)
        scale = gamma / jnp.sqrt(var + EPS)
        shift = beta - mean * scale
        return scale, shift

    w1, b1 = conv(keys[0], CIN, C1)
    s1, t1 = bn(keys[1], C1)
    w2, b2 = conv(keys[2], C1, C2)
    s2, t2 = bn(keys[3], C2)
    w3, b3 = conv(keys[4], C2, C3)
    s3, t3 = bn(keys[5], C3)
    w4, b4 = conv(keys[6], C3, C4)
    bound = 1.0 / np.sqrt(2 * C4)
    fcw = jax.random.uniform(keys[7], (2 * C4, 1), jnp.float32, -bound, bound)
    fcb = jax.random.uniform(keys[8], (1, 1), jnp.float32, -bound, bound)
    return (w1, b1, s1, t1, w2, b2, s2, t2,
            w3, b3, s3, t3, w4, b4, fcw, fcb)


# ---------------------------- pure-JAX reference -----------------------------

def ref_forward(x, params):
    (w1, b1, s1, t1, w2, b2, s2, t2,
     w3, b3, s3, t3, w4, b4, fcw, fcb) = params

    def conv(h, w, b):   # h: (B, Cin, L), w: (3, Cin, Cout)
        w_oik = jnp.transpose(w, (2, 1, 0))
        y = jax.lax.conv_general_dilated(
            h, w_oik, window_strides=(1,), padding=((1, 1),),
            dimension_numbers=('NCH', 'OIH', 'NCH'))
        return y + b.reshape(1, -1, 1)

    def branch(h):
        h = conv(h, w1, b1)
        h = jnp.maximum(h * s1.reshape(1, -1, 1) + t1.reshape(1, -1, 1), 0.0)
        h = conv(h, w2, b2)
        h = jnp.maximum(h * s2.reshape(1, -1, 1) + t2.reshape(1, -1, 1), 0.0)
        h = conv(h, w3, b3)
        h = jnp.maximum(h * s3.reshape(1, -1, 1) + t3.reshape(1, -1, 1), 0.0)
        h = conv(h, w4, b4)
        return jnp.mean(h, axis=-1)   # (B, 256)

    left = branch(x[:, 0])
    right = branch(x[:, 1])
    comb = jnp.concatenate([left, right], axis=1)   # (B, 512)
    return jax.nn.sigmoid(comb @ fcw + fcb)         # (B, 1)


# ---------------------------------- main -------------------------------------

if __name__ == "__main__":
    key = jax.random.PRNGKey(0)
    kx, kp = jax.random.split(key)
    # PyTorch forward implies x: (batch, 2 stereo sides, 16 channels, L)
    x = jax.random.normal(kx, (B, 2, CIN, L), jnp.float32)
    params = init_params(kp)

    out = jax.block_until_ready(cnn_forward(x, params))
    ref = jax.block_until_ready(ref_forward(x, params))

    assert out.shape == (B, 1)
    np.testing.assert_allclose(np.asarray(out), np.asarray(ref),
                               rtol=1e-4, atol=1e-5)
    print("KERNEL_OK")
</pallas_src>

<mosaic_0001>
module attributes {stable_mosaic.version = 11 : i64} {
  func.func @cnn_kernel(%arg0: i32, %arg1: memref<64x16xf32, #tpu.memory_space<vmem>>, %arg2: memref<48x64xf32, #tpu.memory_space<vmem>>, %arg3: memref<192x128xf32, #tpu.memory_space<vmem>>, %arg4: memref<384x256xf32, #tpu.memory_space<vmem>>, %arg5: memref<768x256xf32, #tpu.memory_space<vmem>>, %arg6: memref<8x256xf32, #tpu.memory_space<vmem>>, %arg7: memref<64x256xf32, #tpu.memory_space<vmem>>, %arg8: memref<2x1xf32, #tpu.memory_space<vmem>>) attributes {dimension_semantics = [#tpu.dimension_semantics<arbitrary>], iteration_bounds = array<i64: 1>, scalar_prefetch = 0 : i64, scratch_operands = 0 : i64, tpu.core_type = #tpu.core_type<tc>, window_params = [{pipeline_mode = #tpu.pipeline_mode<synchronous>, transform_indices = @transform_0, window_bounds = array<i64: 64, 16>}, {pipeline_mode = #tpu.pipeline_mode<synchronous>, transform_indices = @transform_1, window_bounds = array<i64: 48, 64>}, {pipeline_mode = #tpu.pipeline_mode<synchronous>, transform_indices = @transform_2, window_bounds = array<i64: 192, 128>}, {pipeline_mode = #tpu.pipeline_mode<synchronous>, transform_indices = @transform_3, window_bounds = array<i64: 384, 256>}, {pipeline_mode = #tpu.pipeline_mode<synchronous>, transform_indices = @transform_4, window_bounds = array<i64: 768, 256>}, {pipeline_mode = #tpu.pipeline_mode<synchronous>, transform_indices = @transform_5, window_bounds = array<i64: 8, 256>}, {pipeline_mode = #tpu.pipeline_mode<synchronous>, transform_indices = @transform_6, window_bounds = array<i64: 64, 256>}, {pipeline_mode = #tpu.pipeline_mode<synchronous>, transform_indices = @transform_7, window_bounds = array<i64: 2, 1>}]} {
    %0 = tpu.iota {dimensions = array<i32: 0>} : vector<64x1xi32>
    %c16_i32 = arith.constant 16 : i32
    %c0_i32 = arith.constant 0 : i32
    %1 = arith.cmpi eq, %c16_i32, %c0_i32 : i32
    %c1_i32 = arith.constant 1 : i32
    %2 = arith.select %1, %c1_i32, %c16_i32 : i32
    %3 = vector.broadcast %2 : i32 to vector<64x1xi32>
    %4 = arith.remsi %0, %3 : vector<64x1xi32>
    %c0_i32_0 = arith.constant 0 : i32
    %5 = vector.broadcast %c0_i32_0 : i32 to vector<64x1xi32>
    %6 = arith.cmpi ne, %4, %5 : vector<64x1xi32>
    %c0_i32_1 = arith.constant 0 : i32
    %7 = vector.broadcast %c0_i32_1 : i32 to vector<64x1xi32>
    %8 = arith.cmpi slt, %4, %7 : vector<64x1xi32>
    %c0_i32_2 = arith.constant 0 : i32
    %9 = arith.cmpi slt, %2, %c0_i32_2 : i32
    %10 = vector.broadcast %9 : i1 to vector<64x1xi1>
    %11 = vector.broadcast %10 : vector<64x1xi1> to vector<64x1xi1>
    %12 = arith.xori %8, %11 : vector<64x1xi1>
    %13 = arith.andi %12, %6 : vector<64x1xi1>
    %14 = vector.broadcast %2 : i32 to vector<64x1xi32>
    %15 = arith.addi %4, %14 : vector<64x1xi32>
    %16 = arith.select %13, %15, %4 : vector<64x1xi1>, vector<64x1xi32>
    %c0_i32_3 = arith.constant 0 : i32
    %17 = vector.broadcast %c0_i32_3 : i32 to vector<64x1xi32>
    %18 = arith.cmpi eq, %16, %17 : vector<64x1xi32>
    %c15_i32 = arith.constant 15 : i32
    %19 = vector.broadcast %c15_i32 : i32 to vector<64x1xi32>
    %20 = arith.cmpi eq, %16, %19 : vector<64x1xi32>
    %c0 = arith.constant 0 : index
    %c0_4 = arith.constant 0 : index
    %21 = vector.load %arg6[%c0, %c0_4] : memref<8x256xf32, #tpu.memory_space<vmem>>, vector<1x64xf32>
    %c1 = arith.constant 1 : index
    %c0_5 = arith.constant 0 : index
    %22 = vector.load %arg6[%c1, %c0_5] : memref<8x256xf32, #tpu.memory_space<vmem>>, vector<1x64xf32>
    %c2 = arith.constant 2 : index
    %c0_6 = arith.constant 0 : index
    %23 = vector.load %arg6[%c2, %c0_6] : memref<8x256xf32, #tpu.memory_space<vmem>>, vector<1x128xf32>
    %c3 = arith.constant 3 : index
    %c0_7 = arith.constant 0 : index
    %24 = vector.load %arg6[%c3, %c0_7] : memref<8x256xf32, #tpu.memory_space<vmem>>, vector<1x128xf32>
    %c4 = arith.constant 4 : index
    %c0_8 = arith.constant 0 : index
    %25 = vector.load %arg6[%c4, %c0_8] : memref<8x256xf32, #tpu.memory_space<vmem>>, vector<1x256xf32>
    %c5 = arith.constant 5 : index
    %c0_9 = arith.constant 0 : index
    %26 = vector.load %arg6[%c5, %c0_9] : memref<8x256xf32, #tpu.memory_space<vmem>>, vector<1x256xf32>
    %c6 = arith.constant 6 : index
    %c0_10 = arith.constant 0 : index
    %27 = vector.load %arg6[%c6, %c0_10] : memref<8x256xf32, #tpu.memory_space<vmem>>, vector<1x256xf32>
    %c7 = arith.constant 7 : index
    %c0_11 = arith.constant 0 : index
    %28 = vector.load %arg6[%c7, %c0_11] : memref<8x256xf32, #tpu.memory_space<vmem>>, vector<1x1xf32>
    %c0_12 = arith.constant 0 : index
    %c0_13 = arith.constant 0 : index
    %29 = vector.load %arg1[%c0_12, %c0_13] : memref<64x16xf32, #tpu.memory_space<vmem>>, vector<64x16xf32>
    %c1_i32_14 = arith.constant 1 : i32
    %30 = tpu.dynamic_rotate %29 by %c1_i32_14 dim 0 : vector<64x16xf32>, i32 -> vector<64x16xf32>
    %cst = arith.constant 0.000000e+00 : f32
    %31 = vector.shape_cast %18 : vector<64x1xi1> to vector<64x1xi1>
    %32 = vector.broadcast %31 : vector<64x1xi1> to vector<64x16xi1>
    %33 = vector.broadcast %cst : f32 to vector<64x16xf32>
    %34 = arith.select %32, %33, %30 : vector<64x16xi1>, vector<64x16xf32>
    %c63_i32 = arith.constant 63 : i32
    %35 = tpu.dynamic_rotate %29 by %c63_i32 dim 0 : vector<64x16xf32>, i32 -> vector<64x16xf32>
    %cst_15 = arith.constant 0.000000e+00 : f32
    %36 = vector.shape_cast %20 : vector<64x1xi1> to vector<64x1xi1>
    %37 = vector.broadcast %36 : vector<64x1xi1> to vector<64x16xi1>
    %38 = vector.broadcast %cst_15 : f32 to vector<64x16xf32>
    %39 = arith.select %37, %38, %35 : vector<64x16xi1>, vector<64x16xf32>
    %40 = tpu.concatenate %34, %29, %39 in 1 : vector<64x16xf32>, vector<64x16xf32>, vector<64x16xf32> -> vector<64x48xf32>
    %c0_16 = arith.constant 0 : index
    %c0_17 = arith.constant 0 : index
    %41 = vector.load %arg2[%c0_16, %c0_17] : memref<48x64xf32, #tpu.memory_space<vmem>>, vector<48x64xf32>
    %cst_18 = arith.constant dense<0.000000e+00> : vector<64x64xf32>
    %42 = tpu.matmul %40, %41, %cst_18 {dimension_numbers = #tpu.dot_dimension_numbers<[1], [0], [0], [1], [0, 0, 1, 1], [], []>} : vector<64x48xf32>, vector<48x64xf32>, vector<64x64xf32> -> vector<64x64xf32>
    %43 = vector.broadcast %21 : vector<1x64xf32> to vector<64x64xf32>
    %44 = arith.mulf %42, %43 : vector<64x64xf32>
    %45 = vector.broadcast %22 : vector<1x64xf32> to vector<64x64xf32>
    %46 = arith.addf %44, %45 : vector<64x64xf32>
    %cst_19 = arith.constant 0.000000e+00 : f32
    %47 = vector.broadcast %cst_19 : f32 to vector<64x64xf32>
    %48 = arith.maximumf %46, %47 : vector<64x64xf32>
    %c1_i32_20 = arith.constant 1 : i32
    %49 = tpu.dynamic_rotate %48 by %c1_i32_20 dim 0 : vector<64x64xf32>, i32 -> vector<64x64xf32>
    %cst_21 = arith.constant 0.000000e+00 : f32
    %50 = vector.shape_cast %18 : vector<64x1xi1> to vector<64x1xi1>
    %51 = vector.broadcast %50 : vector<64x1xi1> to vector<64x64xi1>
    %52 = vector.broadcast %cst_21 : f32 to vector<64x64xf32>
    %53 = arith.select %51, %52, %49 : vector<64x64xi1>, vector<64x64xf32>
    %c63_i32_22 = arith.constant 63 : i32
    %54 = tpu.dynamic_rotate %48 by %c63_i32_22 dim 0 : vector<64x64xf32>, i32 -> vector<64x64xf32>
    %cst_23 = arith.constant 0.000000e+00 : f32
    %55 = vector.shape_cast %20 : vector<64x1xi1> to vector<64x1xi1>
    %56 = vector.broadcast %55 : vector<64x1xi1> to vector<64x64xi1>
    %57 = vector.broadcast %cst_23 : f32 to vector<64x64xf32>
    %58 = arith.select %56, %57, %54 : vector<64x64xi1>, vector<64x64xf32>
    %59 = tpu.concatenate %53, %48, %58 in 1 : vector<64x64xf32>, vector<64x64xf32>, vector<64x64xf32> -> vector<64x192xf32>
    %c0_24 = arith.constant 0 : index
    %c0_25 = arith.constant 0 : index
    %60 = vector.load %arg3[%c0_24, %c0_25] : memref<192x128xf32, #tpu.memory_space<vmem>>, vector<192x128xf32>
    %cst_26 = arith.constant dense<0.000000e+00> : vector<64x128xf32>
    %61 = tpu.matmul %59, %60, %cst_26 {dimension_numbers = #tpu.dot_dimension_numbers<[1], [0], [0], [1], [0, 0, 1, 1], [], []>} : vector<64x192xf32>, vector<192x128xf32>, vector<64x128xf32> -> vector<64x128xf32>
    %62 = vector.broadcast %23 : vector<1x128xf32> to vector<64x128xf32>
    %63 = arith.mulf %61, %62 : vector<64x128xf32>
    %64 = vector.broadcast %24 : vector<1x128xf32> to vector<64x128xf32>
    %65 = arith.addf %63, %64 : vector<64x128xf32>
    %cst_27 = arith.constant 0.000000e+00 : f32
    %66 = vector.broadcast %cst_27 : f32 to vector<64x128xf32>
    %67 = arith.maximumf %65, %66 : vector<64x128xf32>
    %c1_i32_28 = arith.constant 1 : i32
    %68 = tpu.dynamic_rotate %67 by %c1_i32_28 dim 0 : vector<64x128xf32>, i32 -> vector<64x128xf32>
    %cst_29 = arith.constant 0.000000e+00 : f32
    %69 = vector.shape_cast %18 : vector<64x1xi1> to vector<64x1xi1>
    %70 = vector.broadcast %69 : vector<64x1xi1> to vector<64x128xi1>
    %71 = vector.broadcast %cst_29 : f32 to vector<64x128xf32>
    %72 = arith.select %70, %71, %68 : vector<64x128xi1>, vector<64x128xf32>
    %c63_i32_30 = arith.constant 63 : i32
    %73 = tpu.dynamic_rotate %67 by %c63_i32_30 dim 0 : vector<64x128xf32>, i32 -> vector<64x128xf32>
    %cst_31 = arith.constant 0.000000e+00 : f32
    %74 = vector.shape_cast %20 : vector<64x1xi1> to vector<64x1xi1>
    %75 = vector.broadcast %74 : vector<64x1xi1> to vector<64x128xi1>
    %76 = vector.broadcast %cst_31 : f32 to vector<64x128xf32>
    %77 = arith.select %75, %76, %73 : vector<64x128xi1>, vector<64x128xf32>
    %78 = tpu.concatenate %72, %67, %77 in 1 : vector<64x128xf32>, vector<64x128xf32>, vector<64x128xf32> -> vector<64x384xf32>
    %c0_32 = arith.constant 0 : index
    %c0_33 = arith.constant 0 : index
    %79 = vector.load %arg4[%c0_32, %c0_33] : memref<384x256xf32, #tpu.memory_space<vmem>>, vector<384x256xf32>
    %cst_34 = arith.constant dense<0.000000e+00> : vector<64x256xf32>
    %80 = tpu.matmul %78, %79, %cst_34 {dimension_numbers = #tpu.dot_dimension_numbers<[1], [0], [0], [1], [0, 0, 1, 1], [], []>} : vector<64x384xf32>, vector<384x256xf32>, vector<64x256xf32> -> vector<64x256xf32>
    %81 = vector.broadcast %25 : vector<1x256xf32> to vector<64x256xf32>
    %82 = arith.mulf %80, %81 : vector<64x256xf32>
    %83 = vector.broadcast %26 : vector<1x256xf32> to vector<64x256xf32>
    %84 = arith.addf %82, %83 : vector<64x256xf32>
    %cst_35 = arith.constant 0.000000e+00 : f32
    %85 = vector.broadcast %cst_35 : f32 to vector<64x256xf32>
    %86 = arith.maximumf %84, %85 : vector<64x256xf32>
    %c1_i32_36 = arith.constant 1 : i32
    %87 = tpu.dynamic_rotate %86 by %c1_i32_36 dim 0 : vector<64x256xf32>, i32 -> vector<64x256xf32>
    %cst_37 = arith.constant 0.000000e+00 : f32
    %88 = vector.shape_cast %18 : vector<64x1xi1> to vector<64x1xi1>
    %89 = vector.broadcast %88 : vector<64x1xi1> to vector<64x256xi1>
    %90 = vector.broadcast %cst_37 : f32 to vector<64x256xf32>
    %91 = arith.select %89, %90, %87 : vector<64x256xi1>, vector<64x256xf32>
    %c63_i32_38 = arith.constant 63 : i32
    %92 = tpu.dynamic_rotate %86 by %c63_i32_38 dim 0 : vector<64x256xf32>, i32 -> vector<64x256xf32>
    %cst_39 = arith.constant 0.000000e+00 : f32
    %93 = vector.shape_cast %20 : vector<64x1xi1> to vector<64x1xi1>
    %94 = vector.broadcast %93 : vector<64x1xi1> to vector<64x256xi1>
    %95 = vector.broadcast %cst_39 : f32 to vector<64x256xf32>
    %96 = arith.select %94, %95, %92 : vector<64x256xi1>, vector<64x256xf32>
    %97 = tpu.concatenate %91, %86, %96 in 1 : vector<64x256xf32>, vector<64x256xf32>, vector<64x256xf32> -> vector<64x768xf32>
    %c0_40 = arith.constant 0 : index
    %c0_41 = arith.constant 0 : index
    %98 = vector.load %arg5[%c0_40, %c0_41] : memref<768x256xf32, #tpu.memory_space<vmem>>, vector<768x256xf32>
    %cst_42 = arith.constant dense<0.000000e+00> : vector<64x256xf32>
    %99 = tpu.matmul %97, %98, %cst_42 {dimension_numbers = #tpu.dot_dimension_numbers<[1], [0], [0], [1], [0, 0, 1, 1], [], []>} : vector<64x768xf32>, vector<768x256xf32>, vector<64x256xf32> -> vector<64x256xf32>
    %100 = vector.broadcast %27 : vector<1x256xf32> to vector<64x256xf32>
    %101 = arith.addf %99, %100 : vector<64x256xf32>
    %c0_43 = arith.constant 0 : index
    %c0_44 = arith.constant 0 : index
    %102 = vector.load %arg7[%c0_43, %c0_44] : memref<64x256xf32, #tpu.memory_space<vmem>>, vector<64x256xf32>
    %103 = arith.mulf %101, %102 : vector<64x256xf32>
    %104 = vector.shape_cast %103 : vector<64x256xf32> to vector<2x32x256xf32>
    %cst_45 = arith.constant dense<0.000000e+00> : vector<2x256xf32>
    %105 = vector.multi_reduction <add>, %104, %cst_45 [1] : vector<2x32x256xf32> to vector<2x256xf32>
    %cst_46 = arith.constant dense<0.000000e+00> : vector<2xf32>
    %106 = vector.multi_reduction <add>, %105, %cst_46 [1] : vector<2x256xf32> to vector<2xf32>
    %107 = vector.shape_cast %106 : vector<2xf32> to vector<2x1xf32>
    %108 = vector.broadcast %28 : vector<1x1xf32> to vector<2x1xf32>
    %109 = arith.addf %107, %108 : vector<2x1xf32>
    %110 = arith.negf %109 : vector<2x1xf32>
    %111 = math.exp %110 : vector<2x1xf32>
    %cst_47 = arith.constant 1.000000e+00 : f32
    %112 = vector.broadcast %cst_47 : f32 to vector<2x1xf32>
    %113 = arith.addf %112, %111 : vector<2x1xf32>
    %114 = arith.divf %112, %113 : vector<2x1xf32>
    %c0_48 = arith.constant 0 : index
    %c0_49 = arith.constant 0 : index
    %115 = vector.load %arg8[%c0_48, %c0_49] : memref<2x1xf32, #tpu.memory_space<vmem>>, vector<2x1xf32>
    tpu.vector_store %arg8[%c0_48, %c0_49], %114 {strides = array<i32>} : memref<2x1xf32, #tpu.memory_space<vmem>>, vector<2x1xf32>,
    return
  }
  func.func @transform_0(%arg0: i32) -> (i32, i32) {
    %c0_i32 = arith.constant 0 : i32
    %c0_i32_0 = arith.constant 0 : i32
    %c0_i32_1 = arith.constant 0 : i32
    return %c0_i32, %c0_i32_0 : i32, i32
  }
  func.func @transform_1(%arg0: i32) -> (i32, i32) {
    %c0_i32 = arith.constant 0 : i32
    %c0_i32_0 = arith.constant 0 : i32
    %c0_i32_1 = arith.constant 0 : i32
    return %c0_i32, %c0_i32_0 : i32, i32
  }
  func.func @transform_2(%arg0: i32) -> (i32, i32) {
    %c0_i32 = arith.constant 0 : i32
    %c0_i32_0 = arith.constant 0 : i32
    %c0_i32_1 = arith.constant 0 : i32
    return %c0_i32, %c0_i32_0 : i32, i32
  }
  func.func @transform_3(%arg0: i32) -> (i32, i32) {
    %c0_i32 = arith.constant 0 : i32
    %c0_i32_0 = arith.constant 0 : i32
    %c0_i32_1 = arith.constant 0 : i32
    return %c0_i32, %c0_i32_0 : i32, i32
  }
  func.func @transform_4(%arg0: i32) -> (i32, i32) {
    %c0_i32 = arith.constant 0 : i32
    %c0_i32_0 = arith.constant 0 : i32
    %c0_i32_1 = arith.constant 0 : i32
    return %c0_i32, %c0_i32_0 : i32, i32
  }
  func.func @transform_5(%arg0: i32) -> (i32, i32) {
    %c0_i32 = arith.constant 0 : i32
    %c0_i32_0 = arith.constant 0 : i32
    %c0_i32_1 = arith.constant 0 : i32
    return %c0_i32, %c0_i32_0 : i32, i32
  }
  func.func @transform_6(%arg0: i32) -> (i32, i32) {
    %c0_i32 = arith.constant 0 : i32
    %c0_i32_0 = arith.constant 0 : i32
    %c0_i32_1 = arith.constant 0 : i32
    return %c0_i32, %c0_i32_0 : i32, i32
  }
  func.func @transform_7(%arg0: i32) -> (i32, i32) {
    %c0_i32 = arith.constant 0 : i32
    %c0_i32_0 = arith.constant 0 : i32
    %c0_i32_1 = arith.constant 0 : i32
    return %c0_i32, %c0_i32_0 : i32, i32
  }
}

</mosaic_0001>

<bundles_post_ra>
// kernel: tpu_custom_call.1
= control target key start
LH: loop header
LB: loop body
LE: loop exit
PB: predicated region body
PF: predicated region fallthrough
CT: control target
= control target key end

     0   :  { %12 = vsyncpa [#allocation3], 0  ;;  %s3390_s0 = inlined_call_operand.vmem [shape: f32[64,16], index: 0, kind: input, shape index: {}]   ;;  %s3391_s1 = inlined_call_operand.vmem [shape: f32[48,64], index: 1, kind: input, shape index: {}]   ;;  %s3392_s2 = inlined_call_operand.hbm [shape: f32[192,128], index: 2, kind: input, shape index: {}]   ;;  %s3393_s3 = inlined_call_operand.hbm [shape: f32[384,256], index: 3, kind: input, shape index: {}]   ;;  %s3394_s4 = inlined_call_operand.hbm [shape: f32[768,256], index: 4, kind: input, shape index: {}]   ;;  %s3395_s5 = inlined_call_operand.vmem [shape: f32[8,256], index: 5, kind: input, shape index: {}]   ;;  %s3396_s6 = inlined_call_operand.hbm [shape: f32[64,256], index: 6, kind: input, shape index: {}]   ;;  %s3397_s7 = inlined_call_operand.vmem [shape: f32[2,1], index: 7, kind: output, shape index: {}]  }
   0x1   :  { %13 = vsyncpa [#allocation5], 0  ;;  %s36_s26 = sshll.u32 %s3393_s3, 4  ;;  %s37_s26 = int_to_ptr.hbm [resolvable:$true] %s36_s26 }
   0x2   :  { %14 = vsyncpa [#allocation8], 0  ;;  %s2315_s27 = smov [#allocation4]   ;;  %s23_s8 = sshll.u32 %s3392_s2, 4  ;;  %s24_s8 = int_to_ptr.hbm [resolvable:$true] %s23_s8 }
   0x3   :  { %s38_s28 = sshll.u32 %s2315_s27, 4  ;;  %s2316_s9 = smov 256   ;;  %s39_s28 = int_to_ptr.vmem [resolvable:$true] %s38_s28 }
   0x4   :  { %s2317_s10 = smov 16   ;;  %s2318_s11 = smov [#allocation2]  }
   0x5   :  { %44 = dma.hbm_to_vmem [thread:$0]  %s37_s26, 12288, %s39_s28, [#allocation5], %s2316_s9, %s2316_s9, %s2317_s10  }
   0x6   :  { %s25_s12 = sshll.u32 %s2318_s11, 4  ;;  %s2319_s13 = smov 128   ;;  %s26_s12 = int_to_ptr.vmem [resolvable:$true] %s25_s12 }
   0x7   :  { %s2320_s14 = smov 8   ;;  %s49_s16 = sshll.u32 %s3394_s4, 4  ;;  %s50_s16 = int_to_ptr.hbm [resolvable:$true] %s49_s16 }
   0x8   :  { %31 = dma.hbm_to_vmem [thread:$0]  %s24_s8, 3072, %s26_s12, [#allocation3], %s2319_s13, %s2319_s13, %s2320_s14  }
   0x9   :  { %s2321_s17 = smov [#allocation6]   ;;  %s64_s20 = sshll.u32 %s3396_s6, 4  ;;  %s65_s20 = int_to_ptr.hbm [resolvable:$true] %s64_s20 }
   0xa   :  { %s51_s18 = sshll.u32 %s2321_s17, 4  ;;  %s2322_s21 = smov [#allocation7]   ;;  %s52_s18 = int_to_ptr.vmem [resolvable:$true] %s51_s18 }
   0xb   :  { %57 = dma.hbm_to_vmem [thread:$0]  %s50_s16, 24576, %s52_s18, [#allocation5], %s2316_s9, %s2316_s9, %s2317_s10  }
   0xc   :  { %s66_s22 = sshll.u32 %s2322_s21, 4  ;;  %s67_s22 = int_to_ptr.vmem [resolvable:$true] %s66_s22 }
   0xd   :  { %72 = dma.hbm_to_vmem [thread:$0]  %s65_s20, 2048, %s67_s22, [#allocation8], %s2316_s9, %s2316_s9, %s2317_s10  }
   0xe   :  { %2309 = dma.done.wait [#allocation3], 3072  }
   0xf   :  { %2310 = vsyncadd [#allocation3], 4294964224 }
  0x10   :  { %2311 = dma.done.wait [#allocation5], 36864  }
  0x11   :  { %2312 = vsyncadd [#allocation5], 4294930432 }
  0x12   :  { %2313 = dma.done.wait [#allocation8], 2048  }
  0x13   :  { %2314 = vsyncadd [#allocation8], 4294965248  ;;  %v89_v0 = vlaneseq  ;;  %v2386_v3 = vld [vmem:[%s3390_s0 + $0x20] sm:$0xff]  ;;  %v2396_v5 = vld [vmem:[%s3390_s0 + $0x28] sm:$0xff]  ;;  %s2323_s11 = smov 32   ;;  %vm375_vm8 = vcmask 130048  }
  0x14   :  { %v2391_v4 = vld [vmem:[%s3390_s0] sm:$0xff]  ;;  %327 = vrot.lane.b32.xlu1 %v2386_v3, %s2317_s10  ;;  %v2405_v7 = vld [vmem:[%s3390_s0 + $0x8] sm:$0xff]  ;;  %v274_v8 = vrot.slane %v2386_v3, 1  ;;  %v275_v10 = vrot.slane %v2396_v5, 1  ;;  %v2414_v12 = vld [vmem:[%s3390_s0 + $0x10] sm:$0xff]  ;;  %v233_v50 = vrot.slane %v2386_v3, 7 }
  0x15   :  { %v2380_v1 = vshrl.u32 %v89_v0, 7  ;;  %319 = vrot.lane.b32.xlu0 %v2391_v4, %s2317_s10  ;;  %v270_v9 = vrot.slane %v2391_v4, 1  ;;  %v271_v11 = vrot.slane %v2405_v7, 1  ;;  %321 = vrot.lane.b32.xlu2 %v2405_v7, %s2317_s10  ;;  %v272_v14 = vrot.slane %v2414_v12, 1  ;;  %v2424_v15 = vld [vmem:[%s3390_s0 + $0x30] sm:$0xff]  ;;  %v398_v23 = vld [vmem:[%s3391_s1 + $0x28] sm:$0xff] }
  0x16   :  { %v276_v21 = vrot.slane %v2424_v15, 1  ;;  %434 = vmatpush.msra.mxu0 %v398_v23  ;;  %2193 = vmatpush.msra.mxu2 %v398_v23  ;;  %v2456_v27 = vld [vmem:[%s3390_s0 + $0x18] sm:$0xff]  ;;  %v397_v43 = vld [vmem:[%s3391_s1 + $0x20] sm:$0xff]  ;;  %v395_v45 = vld [vmem:[%s3391_s1 + $0x10] sm:$0xff]  ;;  %v229_v51 = vrot.slane %v2391_v4, 7  ;;  %vm384_vm9 = vcmask 261120  }
  0x17   :  { %v91_v2 = vadd.s32 8, %v2380_v1  ;;  %vm278_vm0 = vcmp.lt.s32.totalorder %v2380_v1, 7  ;;  %v95_v13 = vadd.s32 40, %v2380_v1  ;;  %v273_v28 = vrot.slane %v2456_v27, 1  ;;  %v2465_v29 = vld [vmem:[%s3390_s0 + $0x38] sm:$0xff]  ;;  %v394_v46 = vld [vmem:[%s3391_s1 + $0x8] sm:$0xff] }
  0x18   :  { %v284_v17 = vsel %vm278_vm0, %v271_v11, %v272_v14  ;;  %v281_v18 = vsel %vm278_vm0, %v274_v8, %v275_v10  ;;  %v285_v19 = vsel %vm278_vm0, %v270_v9, %v271_v11  ;;  %v280_v25 = vsel %vm278_vm0, %v275_v10, %v276_v21  ;;  %435 = vmatpush.msra.mxu0 %v397_v43  ;;  %v396_v44 = vld [vmem:[%s3391_s1 + $0x18] sm:$0xff]  ;;  %v393_v47 = vld [vmem:[%s3391_s1] sm:$0xff]  ;;  %s2324_s25 = smov 64  }
  0x19   :  { %v109_v6 = vand.u32 15, %v91_v2  ;;  %v137_v20 = vand.u32 15, %v95_v13  ;;  %v93_v30 = vadd.s32 24, %v2380_v1  ;;  %v277_v31 = vrot.slane %v2465_v29, 1  ;;  %2194 = vmatpush.msra.mxu2 %v397_v43  ;;  %v827_v60 = vld [vmem:[#allocation4 + $0x178] sm:$0xff] }
  0x1a   :  { %v283_v32 = vsel %vm278_vm0, %v272_v14, %v273_v28  ;;  %v282_v36 = vsel %vm278_vm0, %v273_v28, %v274_v8  ;;  %v97_v37 = vadd.s32 56, %v2380_v1  ;;  %436 = vmatpush.msra.mxu0 %v396_v44  ;;  %v94_v49 = vadd.s32 32, %v2380_v1  ;;  %v823_v40 = vld [vmem:[#allocation4 + $0x158] sm:$0xff] }
  0x1b   :  { %vm2426_vm1 = vcmp.eq.s32.totalorder %v109_v6, 15  ;;  %vm2445_vm2 = vcmp.eq.s32.totalorder %v137_v20, 15  ;;  %v123_v33 = vand.u32 15, %v93_v30  ;;  %v279_v34 = vsel %vm278_vm0, %v276_v21, %v277_v31  ;;  %2195 = vmatpush.msra.mxu2 %v396_v44 }
  0x1c   :  { %v304_v22 = vsel %vm2426_vm1, 0.0, %v284_v17  ;;  %359 = vrot.lane.b32.xlu1 %v281_v18, %s2323_s11  ;;  %v308_v26 = vsel %vm2445_vm2, 0.0, %v280_v25  ;;  %v151_v39 = vand.u32 15, %v97_v37  ;;  %v286_v41 = vsel %vm278_vm0, %v277_v31, %v270_v9  ;;  %437 = vmatpush.msra.mxu0 %v395_v45  ;;  %vm2766_vm14 = vmneg %vm2426_vm1  ;;  %v1370_v31 = vld [vmem:[#allocation6 + $0x2f0] sm:$0xff] }
  0x1d   :  { %351 = vrot.lane.b32.xlu0 %v285_v19, %s2323_s11  ;;  %353 = vrot.lane.b32.xlu2 %v304_v22, %s2323_s11  ;;  %vm2479_vm3 = vcmp.eq.s32.totalorder %v123_v33, 15  ;;  %v130_v52 = vand.u32 15, %v94_v49  ;;  %v232_v53 = vrot.slane %v2456_v27, 7  ;;  %v102_v54 = vand.u32 15, %v2380_v1 }
  0x1e   :  { %v306_v38 = vsel %vm2479_vm3, 0.0, %v282_v36  ;;  %vm2493_vm4 = vcmp.eq.s32.totalorder %v151_v39, 15  ;;  %2196 = vmatpush.msra.mxu2 %v395_v45  ;;  %438 = vmatpush.msra.mxu0 %v394_v46  ;;  %v236_v55 = vrot.slane %v2465_v29, 7  ;;  %vm237_vm5 = vcmp.lt.s32.totalorder %v2380_v1, 1  ;;  %vm2796_vm15 = vmneg %vm2479_vm3 }
  0x1f   :  { %v310_v42 = vsel %vm2493_vm4, 0.0, %v286_v41  ;;  %vm2524_vm6 = vcmp.eq.s32.totalorder %v130_v52, 0  ;;  %v241_v59 = vsel %vm237_vm5, %v232_v53, %v233_v50  ;;  %vm2530_vm7 = vcmp.eq.s32.totalorder %v102_v54, 0  ;;  %v600_v54 = vld [vmem:[#allocation2 + $0xb0] sm:$0xff] }
  0x20   :  { %2197 = vmatpush.msra.mxu2 %v394_v46  ;;  %439 = vmatpush.msra.mxu0 %v393_v47  ;;  %v245_v61 = vsel %vm237_vm5, %v236_v55, %v229_v51  ;;  %v266_v63 = vsel %vm2524_vm6, 0.0, %v241_v59  ;;  %v230_v2 = vrot.slane %v2405_v7, 7  ;;  %vm399_vm10 = vcmask 392192   ;;  %v596_v59 = vld [vmem:[#allocation2 + $0x90] sm:$0xff] }
  0x21   :  { %v262_v0 = vsel %vm2530_vm7, 0.0, %v245_v61  ;;  %v92_v9 = vadd.s32 16, %v2380_v1  ;;  %v234_v13 = vrot.slane %v2396_v5, 7  ;;  %v96_v14 = vadd.s32 48, %v2380_v1  ;;  %v594_v61 = vld [vmem:[#allocation2 + $0x80] sm:$0xff] }
  0x22   :  { %2198 = vmatpush.msra.mxu2 %v393_v47  ;;  %v244_v7 = vsel %vm237_vm5, %v229_v51, %v230_v2  ;;  %v231_v18 = vrot.slane %v2414_v12, 7  ;;  %v235_v23 = vrot.slane %v2424_v15, 7  ;;  %vm569_vm13 = vcmask 523264  }
  0x23   :  { %v116_v17 = vand.u32 15, %v92_v9  ;;  %v240_v21 = vsel %vm237_vm5, %v233_v50, %v234_v13  ;;  %v144_v22 = vand.u32 15, %v96_v14 }
  0x24   :  { %361 = vrot.lane.b32.xlu1 %v308_v26, %s2323_s11  ;;  %v242_v43 = vsel %vm237_vm5, %v231_v18, %v232_v53  ;;  %v601_v53 = vld [vmem:[#allocation2 + $0xb8] sm:$0xff] }
  0x25   :  { %329 = vrot.lane.b32.xlu0 %v2396_v5, %s2317_s10  ;;  %323 = vrot.lane.b32.xlu2 %v2414_v12, %s2317_s10  ;;  %vm2559_vm11 = vcmp.eq.s32.totalorder %v116_v17, 0  ;;  %vm2572_vm12 = vcmp.eq.s32.totalorder %v144_v22, 0 }
  0x26   :  { %675 = vmatpush.msrb.mxu2 %v601_v53 }
  0x28   :  { %676 = vmatpush.msrb.mxu2 %v600_v54 }
  0x2c   :  { %331 = vrot.lane.b32.xlu1 %v2424_v15, %s2317_s10 }
  0x2d   :  { %355 = vrot.lane.b32.xlu0 %v283_v32, %s2323_s11  ;;  %363 = vrot.lane.b32.xlu2 %v279_v34, %s2323_s11  ;;  %v239_v32 = vsel %vm237_vm5, %v234_v13, %v235_v23 }
  0x2e   :  { %v268_v34 = vsel %vm2572_vm12, 0.0, %v239_v32 }
  0x34   :  { %357 = vrot.lane.b32.xlu1 %v306_v38, %s2323_s11 }
  0x35   :  { %325 = vrot.lane.b32.xlu0 %v2456_v27, %s2317_s10  ;;  %333 = vrot.lane.b32.xlu2 %v2465_v29, %s2317_s10  ;;  %v243_v27 = vsel %vm237_vm5, %v230_v2, %v231_v18  ;;  %v597_v29 = vld [vmem:[#allocation2 + $0x98] sm:$0xff] }
  0x36   :  { %v264_v15 = vsel %vm2559_vm11, 0.0, %v243_v27 }
  0x3d   :  { %365 = vrot.lane.b32.xlu0 %v310_v42, %s2323_s11 }
  0x6f   :  { %v322_v48 = vpop.permute.xlu2 %321 }
  0x70   :  { %v377_v20 = vsel %vm375_vm8, %v244_v7, %v322_v48  ;;  %v238_v48 = vsel %vm237_vm5, %v235_v23, %v236_v55  ;;  %v595_v55 = vld [vmem:[#allocation2 + $0x88] sm:$0xff] }
  0x77   :  { %v354_v62 = vpop.permute.xlu2 %353 }
  0x78   :  { %v386_v28 = vsel %vm384_vm9, %v377_v20, %v354_v62  ;;  %v2601_v62 = vld [vmem:[%s3395_s5] ss:$0 sm:$0xff] }
  0x7f   :  { %v324_v19 = vpop.permute.xlu2 %323 }
  0x80   :  { %v378_v33 = vsel %vm375_vm8, %v264_v15, %v324_v19 }
  0x86   :  { %v328_v56 = vpop.permute.xlu1 %327 }
  0x87   :  { %v320_v57 = vpop.permute.xlu0 %319  ;;  %v380_v3 = vsel %vm375_vm8, %v266_v63, %v328_v56  ;;  %v364_v36 = vpop.permute.xlu2 %363  ;;  %v599_v56 = vld [vmem:[#allocation2 + $0xa8] sm:$0xff]  ;;  %v2606_v63 = vld [vmem:[%s3395_s5 + $0x1] ss:$0 sm:$0xff] }
  0x88   :  { %v376_v4 = vsel %vm375_vm8, %v262_v0, %v320_v57  ;;  %677 = vmatpush.msrb.mxu2 %v599_v56  ;;  %v598_v57 = vld [vmem:[#allocation2 + $0xa0] sm:$0xff] }
  0x8a   :  { %678 = vmatpush.msrb.mxu2 %v598_v57 }
  0x8c   :  { %679 = vmatpush.msrb.mxu2 %v597_v29 }
  0x8e   :  { %v360_v6 = vpop.permute.xlu1 %359  ;;  %680 = vmatpush.msrb.mxu2 %v596_v59 }
  0x8f   :  { %v352_v8 = vpop.permute.xlu0 %351  ;;  %v389_v11 = vsel %vm384_vm9, %v380_v3, %v360_v6  ;;  %v334_v49 = vpop.permute.xlu2 %333 }
  0x90   :  { %v385_v10 = vsel %vm384_vm9, %v376_v4, %v352_v8  ;;  %2084 = vmatmul.msk.f32.vlgmr.msra.gmra.mxu2 %vm399_vm10, %v389_v11  ;;  %v383_v50 = vsel %vm375_vm8, %v238_v48, %v334_v49 }
  0x91   :  { %2080 = vmatmul.msk.f32.vlgmr.msra.gmra.mxu0 %vm399_vm10, %v385_v10  ;;  %681 = vmatpush.msrb.mxu2 %v595_v55 }
  0x93   :  { %682 = vmatpush.msrb.mxu2 %v594_v61 }
  0x96   :  { %v362_v25 = vpop.permute.xlu1 %361 }
  0x97   :  { %v330_v26 = vpop.permute.xlu0 %329 }
  0x98   :  { %v381_v12 = vsel %vm375_vm8, %v240_v21, %v330_v26 }
  0x99   :  { %2081 = vmatmul.msk.f32.gmra.mxu0 %vm399_vm10, %v386_v28  ;;  %v390_v30 = vsel %vm384_vm9, %v381_v12, %v362_v25 }
  0x9a   :  { %2085 = vmatmul.msk.f32.gmra.mxu2 %vm399_vm10, %v390_v30 }
  0x9e   :  { %v332_v37 = vpop.permute.xlu1 %331 }
  0x9f   :  { %v356_v38 = vpop.permute.xlu0 %355  ;;  %v382_v39 = vsel %vm375_vm8, %v268_v34, %v332_v37 }
  0xa0   :  { %v387_v41 = vsel %vm384_vm9, %v378_v33, %v356_v38  ;;  %v391_v42 = vsel %vm384_vm9, %v382_v39, %v364_v36 }
  0xa1   :  { %2082 = vmatmul.msk.f32.gmra.mxu0 %vm399_vm10, %v387_v41 }
  0xa2   :  { %2086 = vmatmul.msk.f32.gmra.mxu2 %vm399_vm10, %v391_v42 }
  0xa6   :  { %v358_v45 = vpop.permute.xlu1 %357 }
  0xa7   :  { %v326_v44 = vpop.permute.xlu0 %325 }
  0xa8   :  { %v379_v46 = vsel %vm375_vm8, %v242_v43, %v326_v44 }
  0xa9   :  { %v388_v47 = vsel %vm384_vm9, %v379_v46, %v358_v45 }
  0xaa   :  { %2083 = vmatmul.msk.f32.gmra.mxu0 %vm399_vm10, %v388_v47 }
  0xaf   :  { %v366_v51 = vpop.permute.xlu0 %365 }
  0xb0   :  { %v392_v52 = vsel %vm384_vm9, %v383_v50, %v366_v51 }
  0xb1   :  { %2087 = vmatmul.msk.f32.gmra.mxu2 %vm399_vm10, %v392_v52  ;;  %vm2068_vm10 = vcmask 1024  }
 0x10e   :  { %v441_v0 = vpop.f32.mrf.mxu0 }
 0x10f   :  { %v465_v2 = vmul.f32 %v441_v0, %v2601_v62 }
 0x111   :  { %v473_v3 = vadd.f32 %v465_v2, %v2606_v63 }
 0x113   :  { %v2610_v4 = vmax.f32 %v473_v3, 0.0  ;;  %v453_v6 = vpop.f32.mrf.mxu2 }
 0x114   :  { %v469_v10 = vmul.f32 %v453_v6, %v2601_v62  ;;  %v593_v6 = vld [vmem:[#allocation2 + $0x78] sm:$0xff] }
 0x115   :  { %545 = vrot.lane.b32.xlu1 %v2610_v4, %s2324_s25  ;;  %v513_v17 = vrot.slane %v2610_v4, 1  ;;  %v489_v19 = vrot.slane %v2610_v4, 7  ;;  %626 = vmatpush.msra.mxu1 %v593_v6  ;;  %v580_v4 = vld [vmem:[#allocation2 + $0x10] sm:$0xff] }
 0x116   :  { %v444_v8 = vpop.f32.mrf.mxu0  ;;  %v477_v7 = vadd.f32 %v469_v10, %v2606_v63 }
 0x117   :  { %v466_v9 = vmul.f32 %v444_v8, %v2601_v62  ;;  %v592_v8 = vld [vmem:[#allocation2 + $0x70] sm:$0xff] }
 0x118   :  { %v485_v12 = vmax.f32 %v477_v7, 0.0  ;;  %627 = vmatpush.msra.mxu1 %v592_v8  ;;  %v589_v7 = vld [vmem:[#allocation2 + $0x58] sm:$0xff]  ;;  %v868_v8 = vld [vmem:[#allocation4 + $0x2c0] sm:$0xff] }
 0x119   :  { %v474_v11 = vadd.f32 %v466_v9, %v2606_v63  ;;  %v591_v9 = vld [vmem:[#allocation2 + $0x68] sm:$0xff] }
 0x11a   :  { %v493_v32 = vrot.slane %v485_v12, 7  ;;  %v517_v29 = vrot.slane %v485_v12, 1  ;;  %628 = vmatpush.msra.mxu1 %v591_v9  ;;  %v832_v9 = vld [vmem:[#allocation4 + $0x1a0] sm:$0xff] }
 0x11b   :  { %v482_v13 = vmax.f32 %v474_v11, 0.0  ;;  %v590_v11 = vld [vmem:[#allocation2 + $0x60] sm:$0xff] }
 0x11c   :  { %629 = vmatpush.msra.mxu1 %v590_v11  ;;  %v864_v11 = vld [vmem:[#allocation4 + $0x2a0] sm:$0xff] }
 0x11d   :  { %v456_v14 = vpop.f32.mrf.mxu2  ;;  %547 = vrot.lane.b32.xlu2 %v482_v13, %s2324_s25  ;;  %v514_v18 = vrot.slane %v482_v13, 1  ;;  %v490_v20 = vrot.slane %v482_v13, 7 }
 0x11e   :  { %v470_v21 = vmul.f32 %v456_v14, %v2601_v62  ;;  %v447_v22 = vpop.f32.mrf.mxu0  ;;  %630 = vmatpush.msra.mxu1 %v589_v7  ;;  %v826_v7 = vld [vmem:[#allocation4 + $0x170] sm:$0xff] }
 0x11f   :  { %v467_v23 = vmul.f32 %v447_v22, %v2601_v62  ;;  %v527_v25 = vsel %vm278_vm0, %v513_v17, %v514_v18  ;;  %v2629_v26 = vsel %vm237_vm5, %v489_v19, %v490_v20 }
 0x120   :  { %v478_v27 = vadd.f32 %v470_v21, %v2606_v63  ;;  %2088 = vmatmul.msk.f32.vlgmr.msrb.gmra.mxu2 %vm569_vm13, %v527_v25  ;;  %v587_v21 = vld [vmem:[#allocation2 + $0x48] sm:$0xff] }
 0x121   :  { %v475_v28 = vadd.f32 %v467_v23, %v2606_v63 }
 0x122   :  { %v2634_v30 = vmax.f32 %v478_v27, 0.0 }
 0x123   :  { %v483_v15 = vmax.f32 %v475_v28, 0.0  ;;  %v585_v28 = vld [vmem:[#allocation2 + $0x38] sm:$0xff] }
 0x124   :  { %v494_v33 = vrot.slane %v2634_v30, 7  ;;  %v518_v10 = vrot.slane %v2634_v30, 1 }
 0x125   :  { %v459_v34 = vpop.f32.mrf.mxu2  ;;  %549 = vrot.lane.b32.xlu0 %v483_v15, %s2324_s25  ;;  %553 = vrot.lane.b32.xlu2 %v485_v12, %s2324_s25  ;;  %v515_v36 = vrot.slane %v483_v15, 1  ;;  %v491_v37 = vrot.slane %v483_v15, 7  ;;  %v586_v12 = vld [vmem:[#allocation2 + $0x40] sm:$0xff]  ;;  %v584_v15 = vld [vmem:[#allocation2 + $0x30] sm:$0xff] }
 0x126   :  { %v471_v38 = vmul.f32 %v459_v34, %v2601_v62  ;;  %v2642_v39 = vsel %vm237_vm5, %v493_v32, %v494_v33  ;;  %v523_v14 = vsel %vm278_vm0, %v517_v29, %v518_v10  ;;  %v581_v34 = vld [vmem:[#allocation2 + $0x18] sm:$0xff] }
 0x127   :  { %v450_v41 = vpop.f32.mrf.mxu0  ;;  %v526_v42 = vsel %vm278_vm0, %v514_v18, %v515_v36  ;;  %v2648_v43 = vsel %vm237_vm5, %v490_v20, %v491_v37  ;;  %v588_v20 = vld [vmem:[#allocation2 + $0x50] sm:$0xff] }
 0x128   :  { %v479_v44 = vadd.f32 %v471_v38, %v2606_v63  ;;  %v468_v45 = vmul.f32 %v450_v41, %v2601_v62  ;;  %v530_v46 = vsel %vm2426_vm1, 0.0, %v526_v42  ;;  %631 = vmatpush.msra.mxu1 %v588_v20  ;;  %v862_v20 = vld [vmem:[#allocation4 + $0x290] sm:$0xff]  ;;  %vm2826_vm1 = vmneg %vm2445_vm2 }
 0x129   :  { %2089 = vmatmul.msk.f32.gmra.mxu2 %vm569_vm13, %v530_v46  ;;  %v507_v46 = vsel %vm2559_vm11, 0.0, %v2648_v43 }
 0x12a   :  { %v476_v47 = vadd.f32 %v468_v45, %v2606_v63  ;;  %v487_v48 = vmax.f32 %v479_v44, 0.0  ;;  %632 = vmatpush.msra.mxu1 %v587_v21  ;;  %v818_v21 = vld [vmem:[#allocation4 + $0x130] sm:$0xff] }
 0x12c   :  { %v484_v49 = vmax.f32 %v476_v47, 0.0  ;;  %v495_v50 = vrot.slane %v487_v48, 7  ;;  %v519_v18 = vrot.slane %v487_v48, 1  ;;  %633 = vmatpush.msra.mxu1 %v586_v12  ;;  %v812_v12 = vld [vmem:[#allocation4 + $0x100] sm:$0xff] }
 0x12d   :  { %555 = vrot.lane.b32.xlu0 %v2634_v30, %s2324_s25 }
 0x12e   :  { %551 = vrot.lane.b32.xlu1 %v484_v49, %s2324_s25  ;;  %v516_v51 = vrot.slane %v484_v49, 1  ;;  %v492_v52 = vrot.slane %v484_v49, 7  ;;  %v2661_v53 = vsel %vm237_vm5, %v494_v33, %v495_v50  ;;  %634 = vmatpush.msra.mxu1 %v585_v28  ;;  %v582_v33 = vld [vmem:[#allocation2 + $0x20] sm:$0xff]  ;;  %v854_v28 = vld [vmem:[#allocation4 + $0x250] sm:$0xff] }
 0x130   :  { %v525_v54 = vsel %vm278_vm0, %v515_v36, %v516_v51  ;;  %v2667_v56 = vsel %vm237_vm5, %v491_v37, %v492_v52  ;;  %v2671_v57 = vsel %vm237_vm5, %v492_v52, %v493_v32  ;;  %v524_v61 = vsel %vm278_vm0, %v516_v51, %v517_v29  ;;  %v583_v32 = vld [vmem:[#allocation2 + $0x28] sm:$0xff]  ;;  %635 = vmatpush.msra.mxu1 %v584_v15  ;;  %v850_v15 = vld [vmem:[#allocation4 + $0x230] sm:$0xff] }
 0x131   :  { %2090 = vmatmul.msk.f32.gmra.mxu2 %vm569_vm13, %v525_v54  ;;  %v532_v2 = vsel %vm2479_vm3, 0.0, %v524_v61  ;;  %v579_v36 = vld [vmem:[#allocation2 + $0x8] sm:$0xff]  ;;  %v509_v51 = vsel %vm2524_vm6, 0.0, %v2671_v57  ;;  %v511_v29 = vsel %vm2572_vm12, 0.0, %v2661_v53  ;;  %v838_v61 = vld [vmem:[#allocation4 + $0x1d0] sm:$0xff]  ;;  %vm2864_vm3 = vmneg %vm2493_vm4 }
 0x132   :  { %636 = vmatpush.msra.mxu1 %v583_v32  ;;  %v834_v53 = vld [vmem:[#allocation4 + $0x1b0] sm:$0xff]  ;;  %v848_v32 = vld [vmem:[#allocation4 + $0x220] sm:$0xff] }
 0x134   :  { %v462_v59 = vpop.f32.mrf.mxu2  ;;  %637 = vmatpush.msra.mxu1 %v582_v33  ;;  %v846_v33 = vld [vmem:[#allocation4 + $0x210] sm:$0xff] }
 0x135   :  { %v472_v55 = vmul.f32 %v462_v59, %v2601_v62  ;;  %v842_v59 = vld [vmem:[#allocation4 + $0x1f0] sm:$0xff] }
 0x136   :  { %557 = vrot.lane.b32.xlu1 %v487_v48, %s2324_s25  ;;  %638 = vmatpush.msra.mxu1 %v581_v34  ;;  %v844_v34 = vld [vmem:[#allocation4 + $0x200] sm:$0xff] }
 0x137   :  { %v480_v0 = vadd.f32 %v472_v55, %v2606_v63  ;;  %v840_v55 = vld [vmem:[#allocation4 + $0x1e0] sm:$0xff]  ;;  %917 = vmatpush.msrb.mxu0 %v842_v59  ;;  %v805_v59 = vld [vmem:[#allocation4 + $0xc8] sm:$0xff] }
 0x138   :  { %639 = vmatpush.msra.mxu1 %v580_v4 }
 0x139   :  { %2091 = vmatmul.msk.f32.gmra.mxu2 %vm569_vm13, %v532_v2  ;;  %v488_v3 = vmax.f32 %v480_v0, 0.0  ;;  %v874_v0 = vld [vmem:[#allocation4 + $0x2f0] sm:$0xff]  ;;  %v872_v2 = vld [vmem:[#allocation4 + $0x2e0] sm:$0xff]  ;;  %918 = vmatpush.msrb.mxu0 %v840_v55  ;;  %v873_v55 = vld [vmem:[#allocation4 + $0x2e8] sm:$0xff] }
 0x13a   :  { %640 = vmatpush.msra.mxu1 %v579_v36  ;;  %958 = vmatpush.msra.mxu2 %v874_v0  ;;  %v803_v0 = vld [vmem:[#allocation4 + $0xb8] sm:$0xff] }
 0x13b   :  { %559 = vrot.lane.b32.xlu2 %v488_v3, %s2324_s25  ;;  %v496_v62 = vrot.slane %v488_v3, 7  ;;  %v520_v23 = vrot.slane %v488_v3, 1  ;;  %v836_v3 = vld [vmem:[#allocation4 + $0x1c0] sm:$0xff]  ;;  %919 = vmatpush.msrb.mxu0 %v838_v61  ;;  %v802_v61 = vld [vmem:[#allocation4 + $0xb0] sm:$0xff] }
 0x13c   :  { %959 = vmatpush.msra.mxu2 %v872_v2  ;;  %v871_v2 = vld [vmem:[#allocation4 + $0x2d8] sm:$0xff] }
 0x13d   :  { %v504_v63 = vsel %vm237_vm5, %v496_v62, %v489_v19  ;;  %v2688_v13 = vsel %vm237_vm5, %v495_v50, %v496_v62  ;;  %v522_v19 = vsel %vm278_vm0, %v518_v10, %v519_v18  ;;  %v521_v25 = vsel %vm278_vm0, %v519_v18, %v520_v23  ;;  %920 = vmatpush.msrb.mxu0 %v836_v3  ;;  %v866_v62 = vld [vmem:[#allocation4 + $0x2b0] sm:$0xff]  ;;  %v820_v18 = vld [vmem:[#allocation4 + $0x140] sm:$0xff] }
 0x13e   :  { %v534_v22 = vsel %vm2445_vm2, 0.0, %v522_v19  ;;  %v528_v27 = vsel %vm278_vm0, %v520_v23, %v513_v17  ;;  %v578_v17 = vld [vmem:[#allocation2] sm:$0xff]  ;;  %v505_v38 = vsel %vm2530_vm7, 0.0, %v504_v63  ;;  %v830_v10 = vld [vmem:[#allocation4 + $0x190] sm:$0xff]  ;;  %vm2848_vm2 = vmneg %vm2530_vm7 }
 0x13f   :  { %v536_v30 = vsel %vm2493_vm4, 0.0, %v528_v27  ;;  %641 = vmatpush.msra.mxu1 %v578_v17  ;;  %921 = vmatpush.msrb.mxu0 %v834_v53  ;;  %v828_v63 = vld [vmem:[#allocation4 + $0x180] sm:$0xff]  ;;  %v858_v23 = vld [vmem:[#allocation4 + $0x270] sm:$0xff]  ;;  %vm2883_vm4 = vmneg %vm2559_vm11 }
 0x140   :  { %v860_v19 = vld [vmem:[#allocation4 + $0x280] sm:$0xff]  ;;  %vm2903_vm7 = vmneg %vm2524_vm6 }
 0x141   :  { %2092 = vmatmul.msk.f32.gmra.mxu2 %vm569_vm13, %v523_v14  ;;  %922 = vmatpush.msrb.mxu0 %v832_v9  ;;  %v822_v14 = vld [vmem:[#allocation4 + $0x150] sm:$0xff]  ;;  %v856_v27 = vld [vmem:[#allocation4 + $0x260] sm:$0xff]  ;;  %vm2923_vm6 = vmneg %vm2572_vm12 }
 0x142   :  { %v2734_v17 = vld [vmem:[%s3395_s5 + $0x2] ss:$0 sm:$0xff] }
 0x143   :  { %923 = vmatpush.msrb.mxu0 %v830_v10 }
 0x145   :  { %924 = vmatpush.msrb.mxu0 %v828_v63  ;;  %v798_v63 = vld [vmem:[#allocation4 + $0x90] sm:$0xff] }
 0x147   :  { %925 = vmatpush.msrb.mxu0 %v826_v7  ;;  %v799_v7 = vld [vmem:[#allocation4 + $0x98] sm:$0xff] }
 0x149   :  { %2093 = vmatmul.msk.f32.gmra.mxu2 %vm569_vm13, %v534_v22  ;;  %v816_v22 = vld [vmem:[#allocation4 + $0x120] sm:$0xff] }
 0x151   :  { %2094 = vmatmul.msk.f32.gmra.mxu2 %vm569_vm13, %v521_v25  ;;  %v814_v25 = vld [vmem:[#allocation4 + $0x110] sm:$0xff] }
 0x159   :  { %2095 = vmatmul.msk.f32.gmra.mxu2 %vm569_vm13, %v536_v30  ;;  %v852_v30 = vld [vmem:[#allocation4 + $0x240] sm:$0xff] }
 0x177   :  { %v548_v42 = vpop.permute.xlu2 %547 }
 0x178   :  { %v571_v44 = vsel %vm569_vm13, %v2629_v26, %v548_v42 }
 0x17f   :  { %v554_v50 = vpop.permute.xlu2 %553 }
 0x180   :  { %v574_v26 = vsel %vm569_vm13, %v509_v51, %v554_v50  ;;  %v809_v50 = vld [vmem:[#allocation4 + $0xe8] sm:$0xff] }
 0x187   :  { %v546_v37 = vpop.permute.xlu1 %545 }
 0x188   :  { %v570_v41 = vsel %vm569_vm13, %v505_v38, %v546_v37 }
 0x189   :  { %642 = vmatmul.f32.vlgmr.msra.gmra.mxu1 %v570_v41  ;;  %v2739_v41 = vld [vmem:[%s3395_s5 + $0x3] ss:$0 sm:$0xff] }
 0x191   :  { %645 = vmatmul.f32.gmra.mxu1 %v571_v44 }
 0x195   :  { %v560_v57 = vpop.permute.xlu2 %559 }
 0x196   :  { %v577_v6 = vsel %vm569_vm13, %v2688_v13, %v560_v57  ;;  %v824_v13 = vld [vmem:[#allocation4 + $0x160] sm:$0xff] }
 0x197   :  { %v550_v45 = vpop.permute.xlu0 %549  ;;  %926 = vmatpush.msrb.mxu0 %v824_v13  ;;  %v867_v13 = vld [vmem:[#allocation4 + $0x2b8] sm:$0xff] }
 0x198   :  { %v572_v47 = vsel %vm569_vm13, %v507_v46, %v550_v45  ;;  %v810_v45 = vld [vmem:[#allocation4 + $0xf0] sm:$0xff]  ;;  %v811_v46 = vld [vmem:[#allocation4 + $0xf8] sm:$0xff] }
 0x199   :  { %648 = vmatmul.f32.gmra.mxu1 %v572_v47  ;;  %927 = vmatpush.msrb.mxu0 %v822_v14 }
 0x19a   :  { %876 = vmatpush.msra.mxu3 %v810_v45  ;;  %999 = vmatpush.msrb.mxu1 %v811_v46  ;;  %v789_v45 = vld [vmem:[#allocation4 + $0x48] sm:$0xff] }
 0x19b   :  { %928 = vmatpush.msrb.mxu0 %v820_v18 }
 0x19c   :  { %1000 = vmatpush.msrb.mxu1 %v809_v50  ;;  %v787_v50 = vld [vmem:[#allocation4 + $0x38] sm:$0xff] }
 0x19d   :  { %929 = vmatpush.msrb.mxu0 %v818_v21  ;;  %v797_v21 = vld [vmem:[#allocation4 + $0x88] sm:$0xff] }
 0x19f   :  { %v556_v52 = vpop.permute.xlu0 %555  ;;  %930 = vmatpush.msrb.mxu0 %v816_v22 }
 0x1a0   :  { %v552_v48 = vpop.permute.xlu1 %551  ;;  %v575_v43 = vsel %vm569_vm13, %v2642_v39, %v556_v52  ;;  %v870_v39 = vld [vmem:[#allocation4 + $0x2d0] sm:$0xff] }
 0x1a1   :  { %v573_v49 = vsel %vm569_vm13, %v2667_v56, %v552_v48  ;;  %960 = vmatpush.msra.mxu2 %v870_v39  ;;  %931 = vmatpush.msrb.mxu0 %v814_v25  ;;  %v806_v52 = vld [vmem:[#allocation4 + $0xd0] sm:$0xff]  ;;  %v800_v39 = vld [vmem:[#allocation4 + $0xa0] sm:$0xff]  ;;  %v795_v25 = vld [vmem:[#allocation4 + $0x78] sm:$0xff] }
 0x1a2   :  { %651 = vmatmul.f32.gmra.mxu1 %v573_v49  ;;  %v808_v49 = vld [vmem:[#allocation4 + $0xe0] sm:$0xff] }
 0x1a3   :  { %961 = vmatpush.msra.mxu2 %v868_v8  ;;  %932 = vmatpush.msrb.mxu0 %v812_v12  ;;  %v684_v4 = vpop.f32.mrf.mxu2  ;;  %v869_v8 = vld [vmem:[#allocation4 + $0x2c8] sm:$0xff] }
 0x1a4   :  { %877 = vmatpush.msra.mxu3 %v808_v49  ;;  %v786_v49 = vld [vmem:[#allocation4 + $0x30] sm:$0xff] }
 0x1a5   :  { %962 = vmatpush.msra.mxu2 %v866_v62 }
 0x1a6   :  { %878 = vmatpush.msra.mxu3 %v806_v52  ;;  %v784_v52 = vld [vmem:[#allocation4 + $0x20] sm:$0xff] }
 0x1a7   :  { %963 = vmatpush.msra.mxu2 %v864_v11 }
 0x1a8   :  { %v558_v54 = vpop.permute.xlu1 %557 }
 0x1a9   :  { %v576_v56 = vsel %vm569_vm13, %v511_v29, %v558_v54  ;;  %964 = vmatpush.msra.mxu2 %v862_v20  ;;  %v875_v54 = vld [vmem:[#allocation4 + $0x2f8] sm:$0xff]  ;;  %v796_v20 = vld [vmem:[#allocation4 + $0x80] sm:$0xff] }
 0x1aa   :  { %654 = vmatmul.f32.gmra.mxu1 %v574_v26  ;;  %1081 = vmatpush.msra.mxu0 %v875_v54 }
 0x1ab   :  { %965 = vmatpush.msra.mxu2 %v860_v19  ;;  %v865_v19 = vld [vmem:[#allocation4 + $0x2a8] sm:$0xff] }
 0x1ac   :  { %v687_v36 = vpop.f32.mrf.mxu2  ;;  %1082 = vmatpush.msra.mxu0 %v873_v55  ;;  %v783_v55 = vld [vmem:[#allocation4 + $0x18] sm:$0xff] }
 0x1ad   :  { %966 = vmatpush.msra.mxu2 %v858_v23  ;;  %v794_v23 = vld [vmem:[#allocation4 + $0x70] sm:$0xff] }
 0x1ae   :  { %1083 = vmatpush.msra.mxu0 %v871_v2  ;;  %v780_v2 = vld [vmem:[#allocation4] sm:$0xff] }
 0x1af   :  { %967 = vmatpush.msra.mxu2 %v856_v27  ;;  %v863_v27 = vld [vmem:[#allocation4 + $0x298] sm:$0xff] }
 0x1b0   :  { %1084 = vmatpush.msra.mxu0 %v869_v8 }
 0x1b1   :  { %968 = vmatpush.msra.mxu2 %v854_v28  ;;  %v792_v28 = vld [vmem:[#allocation4 + $0x60] sm:$0xff] }
 0x1b2   :  { %657 = vmatmul.f32.gmra.mxu1 %v575_v43  ;;  %v807_v43 = vld [vmem:[#allocation4 + $0xd8] sm:$0xff]  ;;  %1085 = vmatpush.msra.mxu0 %v867_v13 }
 0x1b3   :  { %969 = vmatpush.msra.mxu2 %v852_v30  ;;  %1001 = vmatpush.msrb.mxu1 %v807_v43  ;;  %v793_v30 = vld [vmem:[#allocation4 + $0x68] sm:$0xff] }
 0x1b4   :  { %v690_v47 = vpop.f32.mrf.mxu2  ;;  %1086 = vmatpush.msra.mxu0 %v865_v19  ;;  %v785_v43 = vld [vmem:[#allocation4 + $0x28] sm:$0xff] }
 0x1b5   :  { %970 = vmatpush.msra.mxu2 %v850_v15  ;;  %1002 = vmatpush.msrb.mxu1 %v805_v59  ;;  %v861_v15 = vld [vmem:[#allocation4 + $0x288] sm:$0xff] }
 0x1b6   :  { %1087 = vmatpush.msra.mxu0 %v863_v27  ;;  %v839_v27 = vld [vmem:[#allocation4 + $0x1d8] sm:$0xff] }
 0x1b7   :  { %971 = vmatpush.msra.mxu2 %v848_v32  ;;  %1003 = vmatpush.msrb.mxu1 %v803_v0  ;;  %v851_v0 = vld [vmem:[#allocation4 + $0x238] sm:$0xff] }
 0x1b8   :  { %1088 = vmatpush.msra.mxu0 %v861_v15 }
 0x1b9   :  { %972 = vmatpush.msra.mxu2 %v846_v33 }
 0x1ba   :  { %660 = vmatmul.f32.gmra.mxu1 %v576_v56  ;;  %v804_v56 = vld [vmem:[#allocation4 + $0xc0] sm:$0xff] }
 0x1bb   :  { %973 = vmatpush.msra.mxu2 %v844_v34  ;;  %879 = vmatpush.msra.mxu3 %v804_v56  ;;  %v782_v56 = vld [vmem:[#allocation4 + $0x10] sm:$0xff] }
 0x1bc   :  { %v693_v9 = vpop.f32.mrf.mxu2 }
 0x1bd   :  { %880 = vmatpush.msra.mxu3 %v802_v61 }
 0x1bf   :  { %881 = vmatpush.msra.mxu3 %v800_v39  ;;  %v781_v39 = vld [vmem:[#allocation4 + $0x8] sm:$0xff] }
 0x1c1   :  { %882 = vmatpush.msra.mxu3 %v798_v63  ;;  %v847_v63 = vld [vmem:[#allocation4 + $0x218] sm:$0xff] }
 0x1c2   :  { %663 = vmatmul.f32.gmra.mxu1 %v577_v6  ;;  %v801_v6 = vld [vmem:[#allocation4 + $0xa8] sm:$0xff] }
 0x1c3   :  { %1004 = vmatpush.msrb.mxu1 %v801_v6  ;;  %883 = vmatpush.msra.mxu3 %v796_v20 }
 0x1c5   :  { %1005 = vmatpush.msrb.mxu1 %v799_v7  ;;  %884 = vmatpush.msra.mxu3 %v794_v23  ;;  %v841_v7 = vld [vmem:[#allocation4 + $0x1e8] sm:$0xff] }
 0x1c7   :  { %1006 = vmatpush.msrb.mxu1 %v797_v21  ;;  %885 = vmatpush.msra.mxu3 %v792_v28  ;;  %v837_v28 = vld [vmem:[#allocation4 + $0x1c8] sm:$0xff] }
 0x1c9   :  { %1007 = vmatpush.msrb.mxu1 %v795_v25 }
 0x1cb   :  { %1008 = vmatpush.msrb.mxu1 %v793_v30 }
 0x206   :  { %v643_v37 = vpop.f32.mrf.mxu1 }
 0x207   :  { %v685_v38 = vadd.f32 %v684_v4, %v643_v37  ;;  %v790_v4 = vld [vmem:[#allocation4 + $0x50] sm:$0xff] }
 0x208   :  { %886 = vmatpush.msra.mxu3 %v790_v4 }
 0x209   :  { %v708_v42 = vmul.f32 %v685_v38, %v2734_v17  ;;  %v859_v38 = vld [vmem:[#allocation4 + $0x278] sm:$0xff] }
 0x20a   :  { %1089 = vmatpush.msra.mxu0 %v859_v38 }
 0x20b   :  { %v716_v44 = vadd.f32 %v708_v42, %v2739_v41  ;;  %v696_v42 = vpop.f32.mrf.mxu2 }
 0x20d   :  { %v2743_v48 = vmax.f32 %v716_v44, 0.0  ;;  %v788_v44 = vld [vmem:[#allocation4 + $0x40] sm:$0xff] }
 0x20e   :  { %v646_v51 = vpop.f32.mrf.mxu1  ;;  %887 = vmatpush.msra.mxu3 %v788_v44  ;;  %v833_v44 = vld [vmem:[#allocation4 + $0x1a8] sm:$0xff] }
 0x20f   :  { %v688_v26 = vadd.f32 %v687_v36, %v646_v51  ;;  %933 = vmatmul.f32.vlgmr.msrb.gmra.mxu0 %v2743_v48  ;;  %v756_v10 = vrot.slane %v2743_v48, 1  ;;  %v791_v36 = vld [vmem:[#allocation4 + $0x58] sm:$0xff] }
 0x210   :  { %1009 = vmatpush.msrb.mxu1 %v791_v36  ;;  %888 = vmatpush.msra.mxu3 %v786_v49 }
 0x211   :  { %v709_v29 = vmul.f32 %v688_v26, %v2734_v17  ;;  %v855_v26 = vld [vmem:[#allocation4 + $0x258] sm:$0xff] }
 0x212   :  { %1010 = vmatpush.msrb.mxu1 %v789_v45  ;;  %889 = vmatpush.msra.mxu3 %v784_v52 }
 0x213   :  { %v717_v57 = vadd.f32 %v709_v29, %v2739_v41  ;;  %v853_v29 = vld [vmem:[#allocation4 + $0x248] sm:$0xff]  ;;  %v699_v8 = vpop.f32.mrf.mxu2 }
 0x214   :  { %1011 = vmatpush.msrb.mxu1 %v787_v50  ;;  %890 = vmatpush.msra.mxu3 %v782_v56 }
 0x215   :  { %v2748_v3 = vmax.f32 %v717_v57, 0.0 }
 0x216   :  { %v649_v53 = vpop.f32.mrf.mxu1  ;;  %1012 = vmatpush.msrb.mxu1 %v785_v43  ;;  %891 = vmatpush.msra.mxu3 %v780_v2  ;;  %v831_v43 = vld [vmem:[#allocation4 + $0x198] sm:$0xff] }
 0x217   :  { %v691_v62 = vadd.f32 %v690_v47, %v649_v53  ;;  %936 = vmatmul.f32.gmra.mxu0 %v2748_v3  ;;  %v757_v11 = vrot.slane %v2748_v3, 1  ;;  %v857_v47 = vld [vmem:[#allocation4 + $0x268] sm:$0xff]  ;;  %v733_v2 = vrot.slane %v2748_v3, 7 }
 0x218   :  { %1090 = vmatpush.msra.mxu0 %v857_v47  ;;  %1013 = vmatpush.msrb.mxu1 %v783_v55  ;;  %v1363_v55 = vld [vmem:[#allocation6 + $0x2b8] sm:$0xff] }
 0x219   :  { %v710_v14 = vmul.f32 %v691_v62, %v2734_v17  ;;  %v2758_v18 = vsel %vm278_vm0, %v756_v10, %v757_v11 }
 0x21a   :  { %974 = vmatmul.f32.vlgmr.msra.gmra.mxu2 %v2758_v18  ;;  %1091 = vmatpush.msra.mxu0 %v855_v26 }
 0x21b   :  { %v718_v22 = vadd.f32 %v710_v14, %v2739_v41  ;;  %1014 = vmatpush.msrb.mxu1 %v781_v39  ;;  %v845_v14 = vld [vmem:[#allocation4 + $0x208] sm:$0xff]  ;;  %v702_v30 = vpop.f32.mrf.mxu2 }
 0x21c   :  { %1092 = vmatpush.msra.mxu0 %v853_v29  ;;  %v829_v29 = vld [vmem:[#allocation4 + $0x188] sm:$0xff] }
 0x21d   :  { %v2762_v12 = vmax.f32 %v718_v22, 0.0 }
 0x21e   :  { %1093 = vmatpush.msra.mxu0 %v851_v0  ;;  %v825_v0 = vld [vmem:[#allocation4 + $0x168] sm:$0xff] }
 0x21f   :  { %v652_v33 = vpop.f32.mrf.mxu1  ;;  %939 = vmatmul.f32.gmra.mxu0 %v2762_v12  ;;  %v758_v34 = vrot.slane %v2762_v12, 1 }
 0x220   :  { %v694_v37 = vadd.f32 %v693_v9, %v652_v33  ;;  %v849_v9 = vld [vmem:[#allocation4 + $0x228] sm:$0xff] }
 0x221   :  { %v2774_v16 = vsel %vm278_vm0, %v757_v11, %v758_v34  ;;  %v843_v11 = vld [vmem:[#allocation4 + $0x1f8] sm:$0xff]  ;;  %1094 = vmatpush.msra.mxu0 %v849_v9  ;;  %v821_v9 = vld [vmem:[#allocation4 + $0x148] sm:$0xff] }
 0x222   :  { %v711_v46 = vmul.f32 %v694_v37, %v2734_v17  ;;  %2105 = vmatmul.msk.f32.gmra.mxu2 %vm2766_vm14, %v2774_v16  ;;  %1040 = vmatpush.msrb.mxu3 %v843_v11  ;;  %v819_v11 = vld [vmem:[#allocation4 + $0x138] sm:$0xff] }
 0x223   :  { %1095 = vmatpush.msra.mxu0 %v847_v63  ;;  %v817_v63 = vld [vmem:[#allocation4 + $0x128] sm:$0xff] }
 0x224   :  { %v719_v51 = vadd.f32 %v711_v46, %v2739_v41  ;;  %1041 = vmatpush.msrb.mxu3 %v841_v7  ;;  %v705_v46 = vpop.f32.mrf.mxu2  ;;  %v815_v7 = vld [vmem:[#allocation4 + $0x118] sm:$0xff] }
 0x225   :  { %1096 = vmatpush.msra.mxu0 %v845_v14  ;;  %v813_v14 = vld [vmem:[#allocation4 + $0x108] sm:$0xff] }
 0x226   :  { %v2781_v54 = vmax.f32 %v719_v51, 0.0  ;;  %1042 = vmatpush.msrb.mxu3 %v839_v27 }
 0x227   :  { %v655_v59 = vpop.f32.mrf.mxu1 }
 0x228   :  { %v697_v57 = vadd.f32 %v696_v42, %v655_v59  ;;  %942 = vmatmul.f32.gmra.mxu0 %v2781_v54  ;;  %v759_v61 = vrot.slane %v2781_v54, 1  ;;  %1043 = vmatpush.msrb.mxu3 %v837_v28  ;;  %v835_v42 = vld [vmem:[#allocation4 + $0x1b8] sm:$0xff]  ;;  %v1368_v28 = vld [vmem:[#allocation6 + $0x2e0] sm:$0xff] }
 0x22a   :  { %v712_v6 = vmul.f32 %v697_v57, %v2734_v17  ;;  %v2788_v53 = vsel %vm278_vm0, %v758_v34, %v759_v61  ;;  %1044 = vmatpush.msrb.mxu3 %v835_v42 }
 0x22b   :  { %980 = vmatmul.f32.gmra.mxu2 %v2788_v53 }
 0x22c   :  { %v720_v62 = vadd.f32 %v712_v6, %v2739_v41  ;;  %1045 = vmatpush.msrb.mxu3 %v833_v44  ;;  %v1346_v44 = vld [vmem:[#allocation6 + $0x230] sm:$0xff] }
 0x22e   :  { %v2792_v13 = vmax.f32 %v720_v62, 0.0  ;;  %1046 = vmatpush.msrb.mxu3 %v831_v43  ;;  %v734_v62 = vrot.slane %v2762_v12, 7 }
 0x22f   :  { %v658_v20 = vpop.f32.mrf.mxu1 }
 0x230   :  { %v700_v19 = vadd.f32 %v699_v8, %v658_v20  ;;  %945 = vmatmul.f32.gmra.mxu0 %v2792_v13  ;;  %v760_v22 = vrot.slane %v2792_v13, 1  ;;  %1047 = vmatpush.msrb.mxu3 %v829_v29  ;;  %v736_v20 = vrot.slane %v2792_v13, 7 }
 0x232   :  { %v713_v23 = vmul.f32 %v700_v19, %v2734_v17  ;;  %v2805_v25 = vsel %vm278_vm0, %v759_v61, %v760_v22  ;;  %1048 = vmatpush.msrb.mxu3 %v827_v60  ;;  %v1399_v19 = vld [vmem:[#allocation6 + $0x3d8] sm:$0xff] }
 0x233   :  { %2107 = vmatmul.msk.f32.gmra.mxu2 %vm2796_vm15, %v2805_v25 }
 0x234   :  { %v721_v35 = vadd.f32 %v713_v23, %v2739_v41  ;;  %1049 = vmatpush.msrb.mxu3 %v825_v0 }
 0x236   :  { %v2811_v15 = vmax.f32 %v721_v35, 0.0  ;;  %1050 = vmatpush.msrb.mxu3 %v823_v40  ;;  %v1302_v40 = vld [vmem:[#allocation6 + $0xd0] sm:$0xff] }
 0x237   :  { %v661_v33 = vpop.f32.mrf.mxu1 }
 0x238   :  { %v703_v34 = vadd.f32 %v702_v30, %v661_v33  ;;  %948 = vmatmul.f32.gmra.mxu0 %v2811_v15  ;;  %v761_v4 = vrot.slane %v2811_v15, 1  ;;  %1051 = vmatpush.msrb.mxu3 %v821_v9  ;;  %v1366_v30 = vld [vmem:[#allocation6 + $0x2d0] sm:$0xff]  ;;  %v1364_v33 = vld [vmem:[#allocation6 + $0x2c0] sm:$0xff] }
 0x23a   :  { %v714_v36 = vmul.f32 %v703_v34, %v2734_v17  ;;  %v2818_v37 = vsel %vm278_vm0, %v760_v22, %v761_v4  ;;  %1052 = vmatpush.msrb.mxu3 %v819_v11  ;;  %v737_v22 = vrot.slane %v2811_v15, 7  ;;  %v1362_v34 = vld [vmem:[#allocation6 + $0x2b0] sm:$0xff] }
 0x23b   :  { %986 = vmatmul.f32.gmra.mxu2 %v2818_v37 }
 0x23c   :  { %v722_v38 = vadd.f32 %v714_v36, %v2739_v41  ;;  %1053 = vmatpush.msrb.mxu3 %v817_v63  ;;  %v742_v58 = vsel %vm237_vm5, %v736_v20, %v737_v22  ;;  %v1358_v36 = vld [vmem:[#allocation6 + $0x290] sm:$0xff]  ;;  %v1300_v63 = vld [vmem:[#allocation6 + $0xc0] sm:$0xff] }
 0x23e   :  { %v2822_v45 = vmax.f32 %v722_v38, 0.0  ;;  %1054 = vmatpush.msrb.mxu3 %v815_v7  ;;  %v1348_v38 = vld [vmem:[#allocation6 + $0x240] sm:$0xff] }
 0x23f   :  { %v664_v47 = vpop.f32.mrf.mxu1 }
 0x240   :  { %v706_v50 = vadd.f32 %v705_v46, %v664_v47  ;;  %951 = vmatmul.f32.gmra.mxu0 %v2822_v45  ;;  %v762_v51 = vrot.slane %v2822_v45, 1  ;;  %1055 = vmatpush.msrb.mxu3 %v813_v14  ;;  %v738_v23 = vrot.slane %v2822_v45, 7  ;;  %v1342_v46 = vld [vmem:[#allocation6 + $0x210] sm:$0xff]  ;;  %v1340_v47 = vld [vmem:[#allocation6 + $0x200] sm:$0xff] }
 0x241   :  { %v1298_v14 = vld [vmem:[#allocation6 + $0xb0] sm:$0xff] }
 0x242   :  { %v715_v26 = vmul.f32 %v706_v50, %v2734_v17  ;;  %v2835_v52 = vsel %vm278_vm0, %v761_v4, %v762_v51  ;;  %v732_v17 = vrot.slane %v2743_v48, 7  ;;  %v741_v35 = vsel %vm237_vm5, %v737_v22, %v738_v23  ;;  %v1360_v4 = vld [vmem:[#allocation6 + $0x2a0] sm:$0xff]  ;;  %v1303_v22 = vld [vmem:[#allocation6 + $0xd8] sm:$0xff] }
 0x243   :  { %2109 = vmatmul.msk.f32.gmra.mxu2 %vm2826_vm1, %v2835_v52 }
 0x244   :  { %v723_v24 = vadd.f32 %v715_v26, %v2739_v41  ;;  %v746_v6 = vsel %vm237_vm5, %v732_v17, %v733_v2 }
 0x246   :  { %v2841_v56 = vmax.f32 %v723_v24, 0.0 }
 0x248   :  { %954 = vmatmul.f32.gmra.mxu0 %v2841_v56  ;;  %v739_v59 = vrot.slane %v2841_v56, 7  ;;  %v763_v41 = vrot.slane %v2841_v56, 1 }
 0x24a   :  { %v747_v57 = vsel %vm237_vm5, %v739_v59, %v732_v17  ;;  %v764_v61 = vsel %vm278_vm0, %v762_v51, %v763_v41  ;;  %v771_v8 = vsel %vm278_vm0, %v763_v41, %v756_v10  ;;  %v745_v10 = vsel %vm237_vm5, %v733_v2, %v734_v62 }
 0x24b   :  { %2097 = vmatmul.msk.f32.vlgmr.msra.gmra.mxu3 %vm2848_vm2, %v747_v57  ;;  %992 = vmatmul.f32.gmra.mxu2 %v764_v61  ;;  %v740_v27 = vsel %vm237_vm5, %v738_v23, %v739_v59 }
 0x24c   :  { %2113 = vmatmul.msk.f32.vlgmr.msrb.gmra.mxu1 %vm2848_vm2, %v747_v57  ;;  %1555 = vmatpush.msra.mxu3 %v1370_v31  ;;  %v1306_v57 = vld [vmem:[#allocation6 + $0xf0] sm:$0xff]  ;;  %v1396_v31 = vld [vmem:[#allocation6 + $0x3c0] sm:$0xff] }
 0x24d   :  { %1473 = vmatpush.msrb.mxu2 %v1306_v57  ;;  %v1284_v57 = vld [vmem:[#allocation6 + $0x40] sm:$0xff] }
 0x24e   :  { %1556 = vmatpush.msra.mxu3 %v1368_v28  ;;  %v1301_v28 = vld [vmem:[#allocation6 + $0xc8] sm:$0xff] }
 0x250   :  { %1097 = vmatmul.f32.vlgmr.msra.gmra.mxu0 %v2758_v18  ;;  %1557 = vmatpush.msra.mxu3 %v1366_v30  ;;  %v1436_v18 = vld [vmem:[#allocation6 + $0x500] sm:$0xff] }
 0x252   :  { %1558 = vmatpush.msra.mxu3 %v1364_v33  ;;  %v1294_v33 = vld [vmem:[#allocation6 + $0x90] sm:$0xff] }
 0x253   :  { %895 = vmatmul.f32.gmra.mxu3 %v746_v6  ;;  %2111 = vmatmul.msk.f32.gmra.mxu2 %vm2864_vm3, %v771_v8 }
 0x254   :  { %1018 = vmatmul.f32.gmra.mxu1 %v746_v6  ;;  %1559 = vmatpush.msra.mxu3 %v1362_v34  ;;  %v1304_v6 = vld [vmem:[#allocation6 + $0xe0] sm:$0xff]  ;;  %v1394_v34 = vld [vmem:[#allocation6 + $0x3b0] sm:$0xff] }
 0x255   :  { %1474 = vmatpush.msrb.mxu2 %v1304_v6  ;;  %v1282_v6 = vld [vmem:[#allocation6 + $0x30] sm:$0xff] }
 0x256   :  { %1560 = vmatpush.msra.mxu3 %v1360_v4  ;;  %v1299_v4 = vld [vmem:[#allocation6 + $0xb8] sm:$0xff] }
 0x257   :  { %1475 = vmatpush.msrb.mxu2 %v1302_v40 }
 0x258   :  { %2121 = vmatmul.msk.f32.gmra.mxu0 %vm2766_vm14, %v2774_v16  ;;  %v735_v16 = vrot.slane %v2781_v54, 7  ;;  %1561 = vmatpush.msra.mxu3 %v1358_v36 }
 0x259   :  { %1476 = vmatpush.msrb.mxu2 %v1300_v63 }
 0x25a   :  { %v744_v5 = vsel %vm237_vm5, %v734_v62, %v735_v16  ;;  %v1402_v62 = vld [vmem:[#allocation6 + $0x3f0] sm:$0xff] }
 0x25b   :  { %2099 = vmatmul.msk.f32.gmra.mxu3 %vm2883_vm4, %v745_v10  ;;  %1596 = vmatpush.msrb.mxu0 %v1402_v62  ;;  %v1382_v62 = vld [vmem:[#allocation6 + $0x350] sm:$0xff] }
 0x25c   :  { %2115 = vmatmul.msk.f32.gmra.mxu1 %vm2883_vm4, %v745_v10  ;;  %v1307_v10 = vld [vmem:[#allocation6 + $0xf8] sm:$0xff]  ;;  %1477 = vmatpush.msrb.mxu2 %v1298_v14 }
 0x260   :  { %1103 = vmatmul.f32.gmra.mxu0 %v2788_v53  ;;  %v743_v53 = vsel %vm237_vm5, %v735_v16, %v736_v20  ;;  %v1400_v16 = vld [vmem:[#allocation6 + $0x3e0] sm:$0xff] }
 0x261   :  { %1597 = vmatpush.msrb.mxu0 %v1400_v16  ;;  %v1280_v16 = vld [vmem:[#allocation6 + $0x20] sm:$0xff] }
 0x263   :  { %901 = vmatmul.f32.gmra.mxu3 %v744_v5 }
 0x264   :  { %1024 = vmatmul.f32.gmra.mxu1 %v744_v5  ;;  %v1305_v5 = vld [vmem:[#allocation6 + $0xe8] sm:$0xff] }
 0x268   :  { %2123 = vmatmul.msk.f32.gmra.mxu0 %vm2796_vm15, %v2805_v25  ;;  %v1391_v25 = vld [vmem:[#allocation6 + $0x398] sm:$0xff] }
 0x26b   :  { %2101 = vmatmul.msk.f32.gmra.mxu3 %vm2903_vm7, %v743_v53 }
 0x26c   :  { %2117 = vmatmul.msk.f32.gmra.mxu1 %vm2903_vm7, %v743_v53  ;;  %v1398_v53 = vld [vmem:[#allocation6 + $0x3d0] sm:$0xff] }
 0x26d   :  { %1598 = vmatpush.msrb.mxu0 %v1398_v53  ;;  %v1378_v53 = vld [vmem:[#allocation6 + $0x330] sm:$0xff] }
 0x26f   :  { %1599 = vmatpush.msrb.mxu0 %v1396_v31  ;;  %v1281_v31 = vld [vmem:[#allocation6 + $0x28] sm:$0xff] }
 0x270   :  { %1109 = vmatmul.f32.gmra.mxu0 %v2818_v37  ;;  %v1350_v37 = vld [vmem:[#allocation6 + $0x250] sm:$0xff] }
 0x271   :  { %1600 = vmatpush.msrb.mxu0 %v1394_v34  ;;  %v1374_v34 = vld [vmem:[#allocation6 + $0x310] sm:$0xff] }
 0x273   :  { %907 = vmatmul.f32.gmra.mxu3 %v742_v58 }
 0x274   :  { %1030 = vmatmul.f32.gmra.mxu1 %v742_v58 }
 0x278   :  { %2125 = vmatmul.msk.f32.gmra.mxu0 %vm2826_vm1, %v2835_v52  ;;  %v2948_v52 = vld [vmem:[%s3395_s5 + $0x4] ss:$8 sm:$0x3] }
 0x27b   :  { %2103 = vmatmul.msk.f32.gmra.mxu3 %vm2923_vm6, %v741_v35 }
 0x27c   :  { %2119 = vmatmul.msk.f32.gmra.mxu1 %vm2923_vm6, %v741_v35  ;;  %v1296_v35 = vld [vmem:[#allocation6 + $0xa0] sm:$0xff] }
 0x27d   :  { %1478 = vmatpush.msrb.mxu2 %v1296_v35 }
 0x27f   :  { %1479 = vmatpush.msrb.mxu2 %v1294_v33 }
 0x280   :  { %1115 = vmatmul.f32.gmra.mxu0 %v764_v61 }
 0x283   :  { %913 = vmatmul.f32.gmra.mxu3 %v740_v27 }
 0x284   :  { %1036 = vmatmul.f32.gmra.mxu1 %v740_v27 }
 0x288   :  { %2127 = vmatmul.msk.f32.gmra.mxu0 %vm2864_vm3, %v771_v8 }
 0x28b   :  { %1056 = vmatmul.f32.vlgmr.msrb.gmra.mxu3 %v2743_v48  ;;  %v1356_v48 = vld [vmem:[#allocation6 + $0x280] sm:$0xff] }
 0x28c   :  { %1562 = vmatpush.msra.mxu3 %v1356_v48  ;;  %v934_v42 = vpop.f32.mrf.mxu0  ;;  %v1292_v48 = vld [vmem:[#allocation6 + $0x80] sm:$0xff] }
 0x28d   :  { %1480 = vmatpush.msrb.mxu2 %v1292_v48 }
 0x293   :  { %1059 = vmatmul.f32.gmra.mxu3 %v2748_v3  ;;  %v1354_v3 = vld [vmem:[#allocation6 + $0x270] sm:$0xff] }
 0x294   :  { %1563 = vmatpush.msra.mxu3 %v1354_v3 }
 0x29b   :  { %1062 = vmatmul.f32.gmra.mxu3 %v2762_v12  ;;  %v1352_v12 = vld [vmem:[#allocation6 + $0x260] sm:$0xff] }
 0x29c   :  { %1564 = vmatpush.msra.mxu3 %v1352_v12  ;;  %v1392_v12 = vld [vmem:[#allocation6 + $0x3a0] sm:$0xff] }
 0x29d   :  { %v975_v50 = vpop.f32.mrf.mxu2  ;;  %1601 = vmatpush.msrb.mxu0 %v1392_v12 }
 0x29e   :  { %1565 = vmatpush.msra.mxu3 %v1350_v37  ;;  %v1297_v37 = vld [vmem:[#allocation6 + $0xa8] sm:$0xff] }
 0x2a0   :  { %1566 = vmatpush.msra.mxu3 %v1348_v38 }
 0x2a2   :  { %1567 = vmatpush.msra.mxu3 %v1346_v44 }
 0x2a3   :  { %1065 = vmatmul.f32.gmra.mxu3 %v2781_v54  ;;  %v1344_v54 = vld [vmem:[#allocation6 + $0x220] sm:$0xff] }
 0x2a4   :  { %1568 = vmatpush.msra.mxu3 %v1344_v54  ;;  %v1390_v54 = vld [vmem:[#allocation6 + $0x390] sm:$0xff] }
 0x2a5   :  { %v978_v26 = vpop.f32.mrf.mxu2  ;;  %1602 = vmatpush.msrb.mxu0 %v1390_v54 }
 0x2a6   :  { %1569 = vmatpush.msra.mxu3 %v1342_v46  ;;  %v1295_v46 = vld [vmem:[#allocation6 + $0x98] sm:$0xff] }
 0x2a8   :  { %1570 = vmatpush.msra.mxu3 %v1340_v47 }
 0x2aa   :  { %1719 = vmatpush.msrb.mxu3 %v1307_v10  ;;  %v1287_v10 = vld [vmem:[#allocation6 + $0x58] sm:$0xff] }
 0x2ab   :  { %1068 = vmatmul.f32.gmra.mxu3 %v2792_v13  ;;  %v937_v13 = vpop.f32.mrf.mxu0 }
 0x2ac   :  { %1720 = vmatpush.msrb.mxu3 %v1305_v5  ;;  %v1380_v5 = vld [vmem:[#allocation6 + $0x340] sm:$0xff] }
 0x2ae   :  { %v981_v61 = vpop.f32.mrf.mxu2  ;;  %1721 = vmatpush.msrb.mxu3 %v1303_v22  ;;  %v1283_v22 = vld [vmem:[#allocation6 + $0x38] sm:$0xff] }
 0x2b0   :  { %1722 = vmatpush.msrb.mxu3 %v1301_v28 }
 0x2b2   :  { %1723 = vmatpush.msrb.mxu3 %v1299_v4  ;;  %v1279_v4 = vld [vmem:[#allocation6 + $0x18] sm:$0xff] }
 0x2b3   :  { %1071 = vmatmul.f32.gmra.mxu3 %v2811_v15  ;;  %v940_v51 = vpop.f32.mrf.mxu0  ;;  %v2953_v15 = vld [vmem:[%s3395_s5 + $0x5] ss:$8 sm:$0x3] }
 0x2b4   :  { %v2961_v17 = vperm.slane %v2953_v15, 0  ;;  %1724 = vmatpush.msrb.mxu3 %v1297_v37  ;;  %v1372_v37 = vld [vmem:[#allocation6 + $0x300] sm:$0xff] }
 0x2b6   :  { %v984_v27 = vpop.f32.mrf.mxu2  ;;  %1725 = vmatpush.msrb.mxu3 %v1295_v46  ;;  %v1336_v46 = vld [vmem:[#allocation6 + $0x1e0] sm:$0xff] }
 0x2bb   :  { %1074 = vmatmul.f32.gmra.mxu3 %v2822_v45  ;;  %v2956_v45 = vperm.slane %v2948_v52, 0  ;;  %v2958_v29 = vpop.f32.mrf.mxu0 }
 0x2c3   :  { %1077 = vmatmul.f32.gmra.mxu3 %v2841_v56  ;;  %v2968_v9 = vpop.f32.mrf.mxu0 }
 0x2cb   :  { %v2976_v3 = vpop.f32.mrf.mxu0 }
 0x2ce   :  { %v893_v24 = vpop.f32.mrf.mxu3 }
 0x2cf   :  { %v935_v43 = vadd.f32 %v934_v42, %v893_v24  ;;  %v1290_v42 = vld [vmem:[#allocation6 + $0x70] sm:$0xff] }
 0x2d0   :  { %1481 = vmatpush.msrb.mxu2 %v1290_v42 }
 0x2d1   :  { %v976_v56 = vadd.f32 %v975_v50, %v935_v43  ;;  %v1288_v50 = vld [vmem:[#allocation6 + $0x60] sm:$0xff]  ;;  %v1286_v43 = vld [vmem:[#allocation6 + $0x50] sm:$0xff] }
 0x2d2   :  { %1482 = vmatpush.msrb.mxu2 %v1288_v50 }
 0x2d3   :  { %v1127_v59 = vmul.f32 %v2956_v45, %v976_v56  ;;  %v987_v56 = vpop.f32.mrf.mxu2 }
 0x2d4   :  { %1483 = vmatpush.msrb.mxu2 %v1286_v43 }
 0x2d5   :  { %v1148_v41 = vadd.f32 %v2961_v17, %v1127_v59  ;;  %v1386_v59 = vld [vmem:[#allocation6 + $0x370] sm:$0xff] }
 0x2d6   :  { %v896_v60 = vpop.f32.mrf.mxu3  ;;  %1484 = vmatpush.msrb.mxu2 %v1284_v57  ;;  %v1330_v57 = vld [vmem:[#allocation6 + $0x1b0] sm:$0xff] }
 0x2d7   :  { %v938_v0 = vadd.f32 %v937_v13, %v896_v60  ;;  %v2965_v2 = vmax.f32 %v1148_v41, 0.0  ;;  %v1291_v41 = vld [vmem:[#allocation6 + $0x78] sm:$0xff]  ;;  %v1289_v60 = vld [vmem:[#allocation6 + $0x68] sm:$0xff] }
 0x2d8   :  { %1485 = vmatpush.msrb.mxu2 %v1282_v6 }
 0x2d9   :  { %v979_v8 = vadd.f32 %v978_v26, %v938_v0  ;;  %1571 = vmatmul.f32.vlgmr.msra.gmra.mxu3 %v2965_v2  ;;  %v1293_v26 = vld [vmem:[#allocation6 + $0x88] sm:$0xff] }
 0x2da   :  { %1726 = vmatpush.msrb.mxu3 %v1293_v26  ;;  %1486 = vmatpush.msrb.mxu2 %v1280_v16  ;;  %v1328_v16 = vld [vmem:[#allocation6 + $0x1a0] sm:$0xff] }
 0x2db   :  { %v1129_v11 = vmul.f32 %v2956_v45, %v979_v8  ;;  %v952_v8 = vpop.f32.mrf.mxu0  ;;  %v990_v35 = vpop.f32.mrf.mxu2 }
 0x2dc   :  { %1727 = vmatpush.msrb.mxu3 %v1291_v41 }
 0x2dd   :  { %v1150_v7 = vadd.f32 %v2961_v17, %v1129_v11 }
 0x2de   :  { %v899_v20 = vpop.f32.mrf.mxu3  ;;  %1728 = vmatpush.msrb.mxu3 %v1289_v60 }
 0x2df   :  { %v941_v58 = vadd.f32 %v940_v51, %v899_v20  ;;  %v2972_v23 = vmax.f32 %v1150_v7, 0.0  ;;  %v1388_v51 = vld [vmem:[#allocation6 + $0x380] sm:$0xff]  ;;  %v1285_v7 = vld [vmem:[#allocation6 + $0x48] sm:$0xff]  ;;  %v1278_v20 = vld [vmem:[#allocation6 + $0x10] sm:$0xff] }
 0x2e0   :  { %1603 = vmatpush.msrb.mxu0 %v1388_v51  ;;  %1729 = vmatpush.msrb.mxu3 %v1287_v10 }
 0x2e1   :  { %v982_v30 = vadd.f32 %v981_v61, %v941_v58  ;;  %1574 = vmatmul.f32.gmra.mxu3 %v2972_v23  ;;  %v1384_v61 = vld [vmem:[#allocation6 + $0x360] sm:$0xff]  ;;  %1487 = vmatpush.msrb.mxu2 %v1278_v20  ;;  %v3008_v20 = vperm.slane %v2948_v52, 1 }
 0x2e2   :  { %1604 = vmatpush.msrb.mxu0 %v1386_v59  ;;  %1730 = vmatpush.msrb.mxu3 %v1285_v7 }
 0x2e3   :  { %v1131_v36 = vmul.f32 %v2956_v45, %v982_v30  ;;  %v1338_v30 = vld [vmem:[#allocation6 + $0x1f0] sm:$0xff]  ;;  %v955_v12 = vpop.f32.mrf.mxu0  ;;  %v993_v50 = vpop.f32.mrf.mxu2 }
 0x2e4   :  { %1605 = vmatpush.msrb.mxu0 %v1384_v61  ;;  %1731 = vmatpush.msrb.mxu3 %v1283_v22 }
 0x2e5   :  { %v1152_v38 = vadd.f32 %v2961_v17, %v1131_v36  ;;  %1514 = vmatpush.msra.mxu1 %v1338_v30 }
 0x2e6   :  { %v902_v44 = vpop.f32.mrf.mxu3  ;;  %1606 = vmatpush.msrb.mxu0 %v1382_v62  ;;  %1732 = vmatpush.msrb.mxu3 %v1281_v31  ;;  %v1322_v31 = vld [vmem:[#allocation6 + $0x170] sm:$0xff] }
 0x2e7   :  { %v944_v47 = vadd.f32 %v2958_v29, %v902_v44  ;;  %v2980_v13 = vmax.f32 %v1152_v38, 0.0  ;;  %v1277_v38 = vld [vmem:[#allocation6 + $0x8] sm:$0xff]  ;;  %1515 = vmatpush.msra.mxu1 %v1336_v46 }
 0x2e8   :  { %1607 = vmatpush.msrb.mxu0 %v1380_v5  ;;  %1733 = vmatpush.msrb.mxu3 %v1279_v4  ;;  %v1326_v5 = vld [vmem:[#allocation6 + $0x190] sm:$0xff] }
 0x2e9   :  { %v985_v24 = vadd.f32 %v984_v27, %v944_v47  ;;  %1577 = vmatmul.f32.gmra.mxu3 %v2980_v13  ;;  %v1376_v27 = vld [vmem:[#allocation6 + $0x320] sm:$0xff]  ;;  %v1334_v47 = vld [vmem:[#allocation6 + $0x1d0] sm:$0xff] }
 0x2ea   :  { %1608 = vmatpush.msrb.mxu0 %v1378_v53  ;;  %1734 = vmatpush.msrb.mxu3 %v1277_v38  ;;  %v1430_v38 = vld [vmem:[#allocation6 + $0x4d0] sm:$0xff] }
 0x2eb   :  { %v1133_v29 = vmul.f32 %v2956_v45, %v985_v24  ;;  %v1016_v24 = vpop.f32.mrf.mxu1  ;;  %1516 = vmatpush.msra.mxu1 %v1334_v47  ;;  %v996_v6 = vpop.f32.mrf.mxu2  ;;  %v1428_v47 = vld [vmem:[#allocation6 + $0x4c0] sm:$0xff] }
 0x2ec   :  { %1609 = vmatpush.msrb.mxu0 %v1376_v27  ;;  %v1324_v27 = vld [vmem:[#allocation6 + $0x180] sm:$0xff] }
 0x2ed   :  { %v1154_v0 = vadd.f32 %v2961_v17, %v1133_v29  ;;  %v1332_v29 = vld [vmem:[#allocation6 + $0x1c0] sm:$0xff] }
 0x2ee   :  { %v905_v40 = vpop.f32.mrf.mxu3  ;;  %1610 = vmatpush.msrb.mxu0 %v1374_v34  ;;  %1517 = vmatpush.msra.mxu1 %v1332_v29  ;;  %v1335_v29 = vld [vmem:[#allocation6 + $0x1d8] sm:$0xff] }
 0x2ef   :  { %v947_v11 = vadd.f32 %v2968_v9, %v905_v40  ;;  %v2986_v63 = vmax.f32 %v1154_v0, 0.0  ;;  %v1276_v9 = vld [vmem:[#allocation6] sm:$0xff] }
 0x2f0   :  { %1488 = vmatpush.msrb.mxu2 %v1276_v9  ;;  %1611 = vmatpush.msrb.mxu0 %v1372_v37 }
 0x2f1   :  { %v988_v14 = vadd.f32 %v987_v56, %v947_v11  ;;  %1580 = vmatmul.f32.gmra.mxu3 %v2986_v63  ;;  %v1098_v56 = vpop.f32.mrf.mxu0  ;;  %1518 = vmatpush.msra.mxu1 %v1330_v57  ;;  %v1431_v57 = vld [vmem:[#allocation6 + $0x4d8] sm:$0xff] }
 0x2f3   :  { %v1135_v58 = vmul.f32 %v2956_v45, %v988_v14  ;;  %v1019_v40 = vpop.f32.mrf.mxu1  ;;  %1519 = vmatpush.msra.mxu1 %v1328_v16  ;;  %v1422_v16 = vld [vmem:[#allocation6 + $0x490] sm:$0xff] }
 0x2f5   :  { %v1156_v28 = vadd.f32 %v2961_v17, %v1135_v58  ;;  %1520 = vmatpush.msra.mxu1 %v1326_v5  ;;  %v3013_v58 = vperm.slane %v2953_v15, 1  ;;  %v1331_v5 = vld [vmem:[#allocation6 + $0x1b8] sm:$0xff] }
 0x2f6   :  { %v908_v33 = vpop.f32.mrf.mxu3 }
 0x2f7   :  { %v950_v36 = vadd.f32 %v2976_v3, %v908_v33  ;;  %v2992_v48 = vmax.f32 %v1156_v28, 0.0  ;;  %v1434_v28 = vld [vmem:[#allocation6 + $0x4f0] sm:$0xff]  ;;  %1521 = vmatpush.msra.mxu1 %v1324_v27 }
 0x2f8   :  { %1637 = vmatpush.msra.mxu2 %v1434_v28  ;;  %v1314_v27 = vld [vmem:[#allocation6 + $0x130] sm:$0xff]  ;;  %v1327_v28 = vld [vmem:[#allocation6 + $0x198] sm:$0xff] }
 0x2f9   :  { %v991_v42 = vadd.f32 %v990_v35, %v950_v36  ;;  %1583 = vmatmul.f32.gmra.mxu3 %v2992_v48  ;;  %v1101_v10 = vpop.f32.mrf.mxu0  ;;  %v1182_v36 = vrot.slane %v2972_v23, 7  ;;  %1522 = vmatpush.msra.mxu1 %v1322_v31 }
 0x2fb   :  { %v1137_v44 = vmul.f32 %v2956_v45, %v991_v42  ;;  %v1022_v35 = vpop.f32.mrf.mxu1  ;;  %v1339_v42 = vld [vmem:[#allocation6 + $0x1f8] sm:$0xff] }
 0x2fc   :  { %1760 = vmatpush.msra.mxu0 %v1339_v42 }
 0x2fd   :  { %v1158_v54 = vadd.f32 %v2961_v17, %v1137_v44  ;;  %v1435_v44 = vld [vmem:[#allocation6 + $0x4f8] sm:$0xff] }
 0x2fe   :  { %v911_v3 = vpop.f32.mrf.mxu3  ;;  %1883 = vmatpush.msra.mxu3 %v1435_v44  ;;  %v1421_v44 = vld [vmem:[#allocation6 + $0x488] sm:$0xff] }
 0x2ff   :  { %v953_v51 = vadd.f32 %v952_v8, %v911_v3  ;;  %v2997_v26 = vmax.f32 %v1158_v54, 0.0  ;;  %v1433_v3 = vld [vmem:[#allocation6 + $0x4e8] sm:$0xff] }
 0x300   :  { %1884 = vmatpush.msra.mxu3 %v1433_v3 }
 0x301   :  { %v994_v43 = vadd.f32 %v993_v50, %v953_v51  ;;  %1586 = vmatmul.f32.gmra.mxu3 %v2997_v26  ;;  %v1104_v30 = vpop.f32.mrf.mxu0  ;;  %v1337_v50 = vld [vmem:[#allocation6 + $0x1e8] sm:$0xff] }
 0x302   :  { %1761 = vmatpush.msra.mxu0 %v1337_v50  ;;  %1885 = vmatpush.msra.mxu3 %v1431_v57 }
 0x303   :  { %v1139_v59 = vmul.f32 %v2956_v45, %v994_v43  ;;  %v1318_v43 = vld [vmem:[#allocation6 + $0x150] sm:$0xff] }
 0x304   :  { %1762 = vmatpush.msra.mxu0 %v1335_v29  ;;  %v1417_v29 = vld [vmem:[#allocation6 + $0x468] sm:$0xff] }
 0x305   :  { %v1160_v41 = vadd.f32 %v2961_v17, %v1139_v59  ;;  %v1025_v59 = vpop.f32.mrf.mxu1 }
 0x306   :  { %v914_v61 = vpop.f32.mrf.mxu3 }
 0x307   :  { %v956_v60 = vadd.f32 %v955_v12, %v914_v61  ;;  %v3002_v0 = vmax.f32 %v1160_v41, 0.0  ;;  %v1432_v12 = vld [vmem:[#allocation6 + $0x4e0] sm:$0xff] }
 0x308   :  { %1638 = vmatpush.msra.mxu2 %v1432_v12  ;;  %v1423_v12 = vld [vmem:[#allocation6 + $0x498] sm:$0xff] }
 0x309   :  { %v997_v8 = vadd.f32 %v996_v6, %v956_v60  ;;  %1589 = vmatmul.f32.gmra.mxu3 %v3002_v0  ;;  %v1184_v6 = vrot.slane %v2980_v13, 7 }
 0x30a   :  { %1639 = vmatpush.msra.mxu2 %v1430_v38  ;;  %v1325_v38 = vld [vmem:[#allocation6 + $0x188] sm:$0xff] }
 0x30b   :  { %v1141_v62 = vmul.f32 %v2956_v45, %v997_v8  ;;  %v1180_v45 = vrot.slane %v2965_v2, 7  ;;  %v1424_v8 = vld [vmem:[#allocation6 + $0x4a0] sm:$0xff] }
 0x30c   :  { %1640 = vmatpush.msra.mxu2 %v1428_v47  ;;  %v1323_v47 = vld [vmem:[#allocation6 + $0x178] sm:$0xff] }
 0x30d   :  { %v1162_v11 = vadd.f32 %v2961_v17, %v1141_v62  ;;  %v1208_v46 = vsel %vm237_vm5, %v1180_v45, %v1182_v36  ;;  %v1333_v62 = vld [vmem:[#allocation6 + $0x1c8] sm:$0xff] }
 0x30e   :  { %v1057_v7 = vpop.f32.mrf.mxu3  ;;  %1763 = vmatpush.msra.mxu0 %v1333_v62  ;;  %v1319_v62 = vld [vmem:[#allocation6 + $0x158] sm:$0xff] }
 0x30f   :  { %v1058_v14 = vadd.f32 %v1057_v7, %v1016_v24  ;;  %v3010_v53 = vmax.f32 %v1162_v11, 0.0  ;;  %v1320_v24 = vld [vmem:[#allocation6 + $0x160] sm:$0xff]  ;;  %v1427_v7 = vld [vmem:[#allocation6 + $0x4b8] sm:$0xff] }
 0x310   :  { %1523 = vmatpush.msra.mxu1 %v1320_v24  ;;  %1764 = vmatpush.msra.mxu0 %v1331_v5  ;;  %v1414_v24 = vld [vmem:[#allocation6 + $0x450] sm:$0xff]  ;;  %v1317_v5 = vld [vmem:[#allocation6 + $0x148] sm:$0xff] }
 0x311   :  { %v1099_v22 = vadd.f32 %v1098_v56, %v1058_v14  ;;  %1592 = vmatmul.f32.gmra.mxu3 %v3010_v53  ;;  %v1194_v17 = vrot.slane %v3010_v53, 7  ;;  %v1426_v56 = vld [vmem:[#allocation6 + $0x4b0] sm:$0xff] }
 0x312   :  { %1641 = vmatpush.msra.mxu2 %v1426_v56  ;;  %1524 = vmatpush.msra.mxu1 %v1318_v43  ;;  %v1321_v43 = vld [vmem:[#allocation6 + $0x168] sm:$0xff] }
 0x313   :  { %v1128_v9 = vmul.f32 %v3008_v20, %v1099_v22  ;;  %v1210_v52 = vsel %vm237_vm5, %v1194_v17, %v1180_v45  ;;  %v1206_v22 = vsel %vm237_vm5, %v1182_v36, %v1184_v6  ;;  %v1420_v45 = vld [vmem:[#allocation6 + $0x480] sm:$0xff]  ;;  %v1418_v36 = vld [vmem:[#allocation6 + $0x470] sm:$0xff] }
 0x314   :  { %2129 = vmatmul.msk.f32.vlgmr.msrb.gmra.mxu2 %vm2848_vm2, %v1210_v52 }
 0x315   :  { %v1149_v15 = vadd.f32 %v3013_v58, %v1128_v9  ;;  %1642 = vmatpush.msra.mxu2 %v1424_v8  ;;  %v1329_v9 = vld [vmem:[#allocation6 + $0x1a8] sm:$0xff] }
 0x316   :  { %v1060_v33 = vpop.f32.mrf.mxu3  ;;  %1765 = vmatpush.msra.mxu0 %v1329_v9 }
 0x317   :  { %v1061_v34 = vadd.f32 %v1060_v33, %v1019_v40  ;;  %v3026_v4 = vmax.f32 %v1149_v15, 0.0  ;;  %v1107_v40 = vpop.f32.mrf.mxu0  ;;  %v1316_v15 = vld [vmem:[#allocation6 + $0x140] sm:$0xff]  ;;  %1643 = vmatpush.msra.mxu2 %v1422_v16 }
 0x318   :  { %1525 = vmatpush.msra.mxu1 %v1316_v15  ;;  %1766 = vmatpush.msra.mxu0 %v1327_v28  ;;  %v1408_v15 = vld [vmem:[#allocation6 + $0x420] sm:$0xff] }
 0x319   :  { %v1102_v37 = vadd.f32 %v1101_v10, %v1061_v34  ;;  %1612 = vmatmul.f32.vlgmr.msrb.gmra.mxu0 %v3026_v4  ;;  %2161 = vmatmul.msk.f32.vlgmr.msrb.gmra.mxu3 %vm2848_vm2, %v1210_v52  ;;  %v1429_v10 = vld [vmem:[#allocation6 + $0x4c8] sm:$0xff]  ;;  %v1186_v34 = vrot.slane %v2986_v63, 7 }
 0x31a   :  { %1886 = vmatpush.msra.mxu3 %v1429_v10  ;;  %v1425_v52 = vld [vmem:[#allocation6 + $0x4a8] sm:$0xff]  ;;  %1644 = vmatpush.msra.mxu2 %v1420_v45  ;;  %v1415_v10 = vld [vmem:[#allocation6 + $0x458] sm:$0xff] }
 0x31b   :  { %v1130_v54 = vmul.f32 %v3008_v20, %v1102_v37  ;;  %v1028_v37 = vpop.f32.mrf.mxu1  ;;  %1526 = vmatpush.msra.mxu1 %v1314_v27  ;;  %v1204_v3 = vsel %vm237_vm5, %v1184_v6, %v1186_v34  ;;  %1767 = vmatpush.msra.mxu0 %v1325_v38  ;;  %v1188_v6 = vrot.slane %v2992_v48, 7  ;;  %v1411_v27 = vld [vmem:[#allocation6 + $0x438] sm:$0xff]  ;;  %v1190_v38 = vrot.slane %v2997_v26, 7 }
 0x31c   :  { %1492 = vmatmul.f32.gmra.mxu2 %v1208_v46  ;;  %1887 = vmatpush.msra.mxu3 %v1427_v7 }
 0x31d   :  { %v1151_v51 = vadd.f32 %v3013_v58, %v1130_v54  ;;  %1645 = vmatpush.msra.mxu2 %v1418_v36  ;;  %1768 = vmatpush.msra.mxu0 %v1323_v47  ;;  %v1202_v9 = vsel %vm237_vm5, %v1186_v34, %v1188_v6  ;;  %v1464_v36 = vld [vmem:[#allocation6 + $0x5e0] sm:$0xff]  ;;  %v1407_v47 = vld [vmem:[#allocation6 + $0x418] sm:$0xff] }
 0x31e   :  { %v1063_v41 = vpop.f32.mrf.mxu3  ;;  %1888 = vmatpush.msra.mxu3 %v1425_v52  ;;  %v1315_v52 = vld [vmem:[#allocation6 + $0x138] sm:$0xff] }
 0x31f   :  { %v1064_v61 = vadd.f32 %v1063_v41, %v1022_v35  ;;  %v3036_v60 = vmax.f32 %v1151_v51, 0.0  ;;  %v1110_v54 = vpop.f32.mrf.mxu0  ;;  %v1419_v51 = vld [vmem:[#allocation6 + $0x478] sm:$0xff]  ;;  %v1310_v41 = vld [vmem:[#allocation6 + $0x110] sm:$0xff]  ;;  %1769 = vmatpush.msra.mxu0 %v1321_v43  ;;  %v1405_v43 = vld [vmem:[#allocation6 + $0x408] sm:$0xff] }
 0x320   :  { %1889 = vmatpush.msra.mxu3 %v1423_v12 }
 0x321   :  { %v1105_v11 = vadd.f32 %v1104_v30, %v1064_v61  ;;  %1615 = vmatmul.f32.gmra.mxu0 %v3036_v60  ;;  %1738 = vmatmul.f32.gmra.mxu3 %v1208_v46  ;;  %v1416_v46 = vld [vmem:[#allocation6 + $0x460] sm:$0xff] }
 0x322   :  { %1890 = vmatpush.msra.mxu3 %v1421_v44  ;;  %1646 = vmatpush.msra.mxu2 %v1416_v46  ;;  %v1409_v44 = vld [vmem:[#allocation6 + $0x428] sm:$0xff] }
 0x323   :  { %v1132_v14 = vmul.f32 %v3008_v20, %v1105_v11  ;;  %v1308_v11 = vld [vmem:[#allocation6 + $0x100] sm:$0xff]  ;;  %v1031_v7 = vpop.f32.mrf.mxu1  ;;  %1770 = vmatpush.msra.mxu0 %v1319_v62 }
 0x324   :  { %2131 = vmatmul.msk.f32.gmra.mxu2 %vm2883_vm4, %v1206_v22  ;;  %1891 = vmatpush.msra.mxu3 %v1419_v51 }
 0x325   :  { %v1153_v35 = vadd.f32 %v3013_v58, %v1132_v14  ;;  %1647 = vmatpush.msra.mxu2 %v1414_v24  ;;  %v1410_v14 = vld [vmem:[#allocation6 + $0x430] sm:$0xff]  ;;  %1771 = vmatpush.msra.mxu0 %v1317_v5  ;;  %v1200_v24 = vsel %vm237_vm5, %v1188_v6, %v1190_v38  ;;  %v1192_v6 = vrot.slane %v3002_v0, 7 }
 0x326   :  { %v1066_v31 = vpop.f32.mrf.mxu3  ;;  %1892 = vmatpush.msra.mxu3 %v1417_v29  ;;  %v1460_v29 = vld [vmem:[#allocation6 + $0x5c0] sm:$0xff]  ;;  %v1458_v5 = vld [vmem:[#allocation6 + $0x5b0] sm:$0xff] }
 0x327   :  { %v1067_v30 = vadd.f32 %v1066_v31, %v1025_v59  ;;  %v3046_v33 = vmax.f32 %v1153_v35, 0.0  ;;  %v1312_v59 = vld [vmem:[#allocation6 + $0x120] sm:$0xff]  ;;  %v1113_v35 = vpop.f32.mrf.mxu0  ;;  %v1466_v31 = vld [vmem:[#allocation6 + $0x5f0] sm:$0xff]  ;;  %1772 = vmatpush.msra.mxu0 %v1315_v52 }
 0x328   :  { %1527 = vmatpush.msra.mxu1 %v1312_v59  ;;  %1893 = vmatpush.msra.mxu3 %v1415_v10  ;;  %v1462_v59 = vld [vmem:[#allocation6 + $0x5d0] sm:$0xff] }
 0x329   :  { %v1108_v42 = vadd.f32 %v1107_v40, %v1067_v30  ;;  %1618 = vmatmul.f32.gmra.mxu0 %v3046_v33  ;;  %2163 = vmatmul.msk.f32.gmra.mxu3 %vm2883_vm4, %v1206_v22  ;;  %v1412_v40 = vld [vmem:[#allocation6 + $0x440] sm:$0xff]  ;;  %v1413_v22 = vld [vmem:[#allocation6 + $0x448] sm:$0xff] }
 0x32a   :  { %1528 = vmatpush.msra.mxu1 %v1310_v41  ;;  %1648 = vmatpush.msra.mxu2 %v1412_v40  ;;  %v1313_v30 = vld [vmem:[#allocation6 + $0x128] sm:$0xff] }
 0x32b   :  { %v1134_v50 = vmul.f32 %v3008_v20, %v1108_v42  ;;  %1894 = vmatpush.msra.mxu3 %v1413_v22  ;;  %v1406_v42 = vld [vmem:[#allocation6 + $0x410] sm:$0xff]  ;;  %1773 = vmatpush.msra.mxu0 %v1313_v30  ;;  %v1452_v30 = vld [vmem:[#allocation6 + $0x580] sm:$0xff] }
 0x32c   :  { %1498 = vmatmul.f32.gmra.mxu2 %v1204_v3  ;;  %1529 = vmatpush.msra.mxu1 %v1308_v11 }
 0x32d   :  { %v1155_v56 = vadd.f32 %v3013_v58, %v1134_v50  ;;  %1649 = vmatpush.msra.mxu2 %v1410_v14  ;;  %1895 = vmatpush.msra.mxu3 %v1411_v27  ;;  %v1404_v50 = vld [vmem:[#allocation6 + $0x400] sm:$0xff] }
 0x32e   :  { %v1069_v57 = vpop.f32.mrf.mxu3  ;;  %1678 = vmatpush.msrb.mxu1 %v1466_v31  ;;  %v1196_v31 = vsel %vm237_vm5, %v1192_v6, %v1194_v17  ;;  %v1228_v17 = vrot.slane %v2965_v2, 1 }
 0x32f   :  { %v1070_v61 = vadd.f32 %v1069_v57, %v1028_v37  ;;  %v3056_v8 = vmax.f32 %v1155_v56, 0.0  ;;  %1650 = vmatpush.msra.mxu2 %v1408_v15  ;;  %1896 = vmatpush.msra.mxu3 %v1409_v44  ;;  %v1034_v56 = vpop.f32.mrf.mxu1  ;;  %v1116_v57 = vpop.f32.mrf.mxu0  ;;  %v1450_v44 = vld [vmem:[#allocation6 + $0x570] sm:$0xff] }
 0x330   :  { %1679 = vmatpush.msrb.mxu1 %v1464_v36 }
 0x331   :  { %v1111_v16 = vadd.f32 %v1110_v54, %v1070_v61  ;;  %1621 = vmatmul.f32.gmra.mxu0 %v3056_v8  ;;  %1744 = vmatmul.f32.gmra.mxu3 %v1204_v3  ;;  %v1311_v54 = vld [vmem:[#allocation6 + $0x118] sm:$0xff]  ;;  %v1309_v3 = vld [vmem:[#allocation6 + $0x108] sm:$0xff] }
 0x332   :  { %1651 = vmatpush.msra.mxu2 %v1406_v42  ;;  %1774 = vmatpush.msra.mxu0 %v1311_v54  ;;  %v1371_v54 = vld [vmem:[#allocation6 + $0x2f8] sm:$0xff] }
 0x333   :  { %v1136_v45 = vmul.f32 %v3008_v20, %v1111_v16  ;;  %1897 = vmatpush.msra.mxu3 %v1407_v47  ;;  %1680 = vmatpush.msrb.mxu1 %v1462_v59  ;;  %v1198_v16 = vsel %vm237_vm5, %v1190_v38, %v1192_v6  ;;  %v1448_v47 = vld [vmem:[#allocation6 + $0x560] sm:$0xff]  ;;  %v1234_v6 = vrot.slane %v2986_v63, 1 }
 0x334   :  { %2133 = vmatmul.msk.f32.gmra.mxu2 %vm2903_vm7, %v1202_v9  ;;  %1775 = vmatpush.msra.mxu0 %v1309_v3  ;;  %v1232_v3 = vrot.slane %v2980_v13, 1 }
 0x335   :  { %v1157_v28 = vadd.f32 %v3013_v58, %v1136_v45  ;;  %1652 = vmatpush.msra.mxu2 %v1404_v50  ;;  %1898 = vmatpush.msra.mxu3 %v1405_v43  ;;  %v1183_v50 = vrot.slane %v3036_v60, 7  ;;  %v1365_v43 = vld [vmem:[#allocation6 + $0x2c8] sm:$0xff] }
 0x336   :  { %v1072_v12 = vpop.f32.mrf.mxu3  ;;  %1681 = vmatpush.msrb.mxu1 %v1460_v29  ;;  %v1465_v29 = vld [vmem:[#allocation6 + $0x5e8] sm:$0xff] }
 0x337   :  { %v1073_v34 = vadd.f32 %v1072_v12, %v1031_v7  ;;  %v3066_v37 = vmax.f32 %v1157_v28, 0.0  ;;  %v1456_v7 = vld [vmem:[#allocation6 + $0x5a0] sm:$0xff]  ;;  %v1037_v22 = vpop.f32.mrf.mxu1  ;;  %v1454_v28 = vld [vmem:[#allocation6 + $0x590] sm:$0xff]  ;;  %1801 = vmatpush.msrb.mxu2 %v1371_v54 }
 0x338   :  { %1682 = vmatpush.msrb.mxu1 %v1458_v5  ;;  %v1459_v5 = vld [vmem:[#allocation6 + $0x5b8] sm:$0xff] }
 0x339   :  { %v1114_v46 = vadd.f32 %v1113_v35, %v1073_v34  ;;  %1624 = vmatmul.f32.gmra.mxu0 %v3066_v37  ;;  %2165 = vmatmul.msk.f32.gmra.mxu3 %vm2903_vm7, %v1202_v9  ;;  %v1119_v35 = vpop.f32.mrf.mxu0  ;;  %v1230_v34 = vrot.slane %v2972_v23, 1  ;;  %v1189_v54 = vrot.slane %v3066_v37, 7 }
 0x33a   :  { %1683 = vmatpush.msrb.mxu1 %v1456_v7 }
 0x33b   :  { %v1138_v51 = vmul.f32 %v3008_v20, %v1114_v46  ;;  %v1256_v42 = vsel %vm278_vm0, %v1228_v17, %v1230_v34  ;;  %v1369_v46 = vld [vmem:[#allocation6 + $0x2e8] sm:$0xff]  ;;  %v1254_v59 = vsel %vm278_vm0, %v1230_v34, %v1232_v3 }
 0x33c   :  { %1504 = vmatmul.f32.gmra.mxu2 %v1200_v24  ;;  %1684 = vmatpush.msrb.mxu1 %v1454_v28  ;;  %v1455_v28 = vld [vmem:[#allocation6 + $0x598] sm:$0xff] }
 0x33d   :  { %v1159_v41 = vadd.f32 %v3013_v58, %v1138_v51  ;;  %1802 = vmatpush.msrb.mxu2 %v1369_v46  ;;  %v1367_v51 = vld [vmem:[#allocation6 + $0x2d8] sm:$0xff]  ;;  %v1238_v46 = vrot.slane %v2997_v26, 1 }
 0x33e   :  { %v1075_v61 = vpop.f32.mrf.mxu3  ;;  %1685 = vmatpush.msrb.mxu1 %v1452_v30  ;;  %v1353_v30 = vld [vmem:[#allocation6 + $0x268] sm:$0xff] }
 0x33f   :  { %v1076_v40 = vadd.f32 %v1075_v61, %v1034_v56  ;;  %v3076_v62 = vmax.f32 %v1159_v41, 0.0  ;;  %1803 = vmatpush.msrb.mxu2 %v1367_v51  ;;  %v1446_v41 = vld [vmem:[#allocation6 + $0x550] sm:$0xff]  ;;  %v1444_v61 = vld [vmem:[#allocation6 + $0x540] sm:$0xff]  ;;  %v1447_v51 = vld [vmem:[#allocation6 + $0x558] sm:$0xff] }
 0x340   :  { %1686 = vmatpush.msrb.mxu1 %v1450_v44  ;;  %v1438_v44 = vld [vmem:[#allocation6 + $0x510] sm:$0xff] }
 0x341   :  { %v1117_v10 = vadd.f32 %v1116_v57, %v1076_v40  ;;  %1627 = vmatmul.f32.gmra.mxu0 %v3076_v62  ;;  %1750 = vmatmul.f32.gmra.mxu3 %v1200_v24  ;;  %v1467_v24 = vld [vmem:[#allocation6 + $0x5f8] sm:$0xff]  ;;  %v1185_v40 = vrot.slane %v3046_v33, 7 }
 0x342   :  { %1687 = vmatpush.msrb.mxu1 %v1448_v47  ;;  %1924 = vmatpush.msrb.mxu0 %v1467_v24  ;;  %v1463_v57 = vld [vmem:[#allocation6 + $0x5d8] sm:$0xff]  ;;  %v1349_v47 = vld [vmem:[#allocation6 + $0x248] sm:$0xff] }
 0x343   :  { %v1140_v11 = vmul.f32 %v3008_v20, %v1117_v10  ;;  %1804 = vmatpush.msrb.mxu2 %v1365_v43  ;;  %v1361_v10 = vld [vmem:[#allocation6 + $0x2a8] sm:$0xff]  ;;  %v1207_v7 = vsel %vm237_vm5, %v1183_v50, %v1185_v40 }
 0x344   :  { %2135 = vmatmul.msk.f32.gmra.mxu2 %vm2923_vm6, %v1198_v16  ;;  %1688 = vmatpush.msrb.mxu1 %v1446_v41  ;;  %v1403_v41 = vld [vmem:[#allocation6 + $0x3f8] sm:$0xff] }
 0x345   :  { %v1161_v14 = vadd.f32 %v3013_v58, %v1140_v11  ;;  %1925 = vmatpush.msrb.mxu0 %v1465_v29  ;;  %1805 = vmatpush.msrb.mxu2 %v1363_v55  ;;  %v1461_v11 = vld [vmem:[#allocation6 + $0x5c8] sm:$0xff]  ;;  %v1191_v29 = vrot.slane %v3076_v62, 7  ;;  %v1240_v55 = vrot.slane %v3002_v0, 1 }
 0x346   :  { %v1078_v45 = vpop.f32.mrf.mxu3  ;;  %1689 = vmatpush.msrb.mxu1 %v1444_v61  ;;  %v1443_v61 = vld [vmem:[#allocation6 + $0x538] sm:$0xff] }
 0x347   :  { %v1079_v9 = vadd.f32 %v1078_v45, %v1037_v22  ;;  %v3086_v52 = vmax.f32 %v1161_v14, 0.0  ;;  %1926 = vmatpush.msrb.mxu0 %v1463_v57  ;;  %1806 = vmatpush.msrb.mxu2 %v1361_v10  ;;  %v1252_v14 = vsel %vm278_vm0, %v1232_v3, %v1234_v6  ;;  %v1357_v22 = vld [vmem:[#allocation6 + $0x288] sm:$0xff]  ;;  %v1442_v45 = vld [vmem:[#allocation6 + $0x530] sm:$0xff]  ;;  %v1347_v3 = vld [vmem:[#allocation6 + $0x238] sm:$0xff] }
 0x348   :  { %1690 = vmatpush.msrb.mxu1 %v1442_v45  ;;  %v1343_v57 = vld [vmem:[#allocation6 + $0x218] sm:$0xff]  ;;  %v1341_v10 = vld [vmem:[#allocation6 + $0x208] sm:$0xff] }
 0x349   :  { %v1120_v15 = vadd.f32 %v1119_v35, %v1079_v9  ;;  %1630 = vmatmul.f32.gmra.mxu0 %v3086_v52  ;;  %2167 = vmatmul.msk.f32.gmra.mxu3 %vm2923_vm6, %v1198_v16  ;;  %v1359_v16 = vld [vmem:[#allocation6 + $0x298] sm:$0xff]  ;;  %v1457_v9 = vld [vmem:[#allocation6 + $0x5a8] sm:$0xff]  ;;  %v1440_v35 = vld [vmem:[#allocation6 + $0x520] sm:$0xff] }
 0x34a   :  { %1927 = vmatpush.msrb.mxu0 %v1461_v11  ;;  %1807 = vmatpush.msrb.mxu2 %v1359_v16  ;;  %v1441_v11 = vld [vmem:[#allocation6 + $0x528] sm:$0xff]  ;;  %v1201_v16 = vsel %vm237_vm5, %v1189_v54, %v1191_v29 }
 0x34b   :  { %v1142_v27 = vmul.f32 %v3008_v20, %v1120_v15  ;;  %v1181_v20 = vrot.slane %v3026_v4, 7  ;;  %v1187_v15 = vrot.slane %v3056_v8, 7  ;;  %1691 = vmatpush.msrb.mxu1 %v1440_v35  ;;  %v1437_v45 = vld [vmem:[#allocation6 + $0x508] sm:$0xff] }
 0x34c   :  { %1510 = vmatmul.f32.gmra.mxu2 %v1196_v31  ;;  %1928 = vmatpush.msrb.mxu0 %v1459_v5  ;;  %v1246_v5 = vsel %vm278_vm0, %v1238_v46, %v1240_v55 }
 0x34d   :  { %v1163_v36 = vadd.f32 %v3013_v58, %v1142_v27  ;;  %v1209_v56 = vsel %vm237_vm5, %v1181_v20, %v1183_v50  ;;  %v1236_v27 = vrot.slane %v2992_v48, 1  ;;  %1808 = vmatpush.msrb.mxu2 %v1357_v22  ;;  %v1205_v34 = vsel %vm237_vm5, %v1185_v40, %v1187_v15  ;;  %1692 = vmatpush.msrb.mxu1 %v1438_v44  ;;  %v1449_v50 = vld [vmem:[#allocation6 + $0x568] sm:$0xff] }
 0x34e   :  { %1929 = vmatpush.msrb.mxu0 %v1457_v9  ;;  %v1203_v24 = vsel %vm237_vm5, %v1187_v15, %v1189_v54  ;;  %v1242_v22 = vrot.slane %v3010_v53, 1  ;;  %v1397_v9 = vld [vmem:[#allocation6 + $0x3c8] sm:$0xff] }
 0x34f   :  { %v3097_v12 = vmax.f32 %v1163_v36, 0.0  ;;  %v1453_v36 = vld [vmem:[#allocation6 + $0x588] sm:$0xff]  ;;  %1693 = vmatpush.msrb.mxu1 %v1436_v18  ;;  %v1248_v43 = vsel %vm278_vm0, %v1236_v27, %v1238_v46  ;;  %v1233_v46 = vrot.slane %v3046_v33, 1 }
 0x350   :  { %1930 = vmatpush.msrb.mxu0 %v1455_v28  ;;  %v1393_v28 = vld [vmem:[#allocation6 + $0x3a8] sm:$0xff] }
 0x351   :  { %1633 = vmatmul.f32.gmra.mxu0 %v3097_v12  ;;  %1756 = vmatmul.f32.gmra.mxu3 %v1196_v31  ;;  %v1195_v38 = vrot.slane %v3097_v12, 7  ;;  %v1355_v31 = vld [vmem:[#allocation6 + $0x278] sm:$0xff] }
 0x352   :  { %1809 = vmatpush.msrb.mxu2 %v1355_v31  ;;  %1931 = vmatpush.msrb.mxu0 %v1453_v36  ;;  %v1395_v31 = vld [vmem:[#allocation6 + $0x3b8] sm:$0xff]  ;;  %v1258_v36 = vsel %vm278_vm0, %v1242_v22, %v1228_v17 }
 0x353   :  { %v1211_v58 = vsel %vm237_vm5, %v1195_v38, %v1181_v20  ;;  %v1250_v20 = vsel %vm278_vm0, %v1234_v6, %v1236_v27  ;;  %v1401_v6 = vld [vmem:[#allocation6 + $0x3e8] sm:$0xff]  ;;  %v1244_v27 = vsel %vm278_vm0, %v1240_v55, %v1242_v22  ;;  %v1237_v55 = vrot.slane %v3066_v37, 1 }
 0x354   :  { %2137 = vmatmul.msk.f32.vlgmr.msra.gmra.mxu1 %vm2848_vm2, %v1211_v58  ;;  %1653 = vmatmul.f32.vlgmr.msra.gmra.mxu2 %v1256_v42 }
 0x355   :  { %1810 = vmatpush.msrb.mxu2 %v1353_v30  ;;  %1842 = vmatpush.msra.mxu1 %v1403_v41 }
 0x357   :  { %1843 = vmatpush.msra.mxu1 %v1401_v6 }
 0x359   :  { %2169 = vmatmul.msk.f32.vlgmr.msra.gmra.mxu0 %vm2848_vm2, %v1211_v58  ;;  %1899 = vmatmul.f32.vlgmr.msra.gmra.mxu3 %v1256_v42  ;;  %v1351_v58 = vld [vmem:[#allocation6 + $0x258] sm:$0xff] }
 0x35a   :  { %v1451_v42 = vld [vmem:[#allocation6 + $0x578] sm:$0xff]  ;;  %1811 = vmatpush.msrb.mxu2 %v1351_v58  ;;  %1844 = vmatpush.msra.mxu1 %v1399_v19  ;;  %v1389_v58 = vld [vmem:[#allocation6 + $0x388] sm:$0xff] }
 0x35b   :  { %1932 = vmatpush.msrb.mxu0 %v1451_v42  ;;  %v1387_v42 = vld [vmem:[#allocation6 + $0x378] sm:$0xff] }
 0x35c   :  { %1533 = vmatmul.f32.gmra.mxu1 %v1209_v56  ;;  %2145 = vmatmul.msk.f32.gmra.mxu2 %vm2766_vm14, %v1254_v59  ;;  %v3156_v40 = vpop.f32.mrf.mxu3 }
 0x35d   :  { %1812 = vmatpush.msrb.mxu2 %v1349_v47  ;;  %1933 = vmatpush.msrb.mxu0 %v1449_v50  ;;  %v1385_v47 = vld [vmem:[#allocation6 + $0x368] sm:$0xff] }
 0x35e   :  { %1845 = vmatpush.msra.mxu1 %v1397_v9  ;;  %v1243_v9 = vrot.slane %v3097_v12, 1 }
 0x35f   :  { %1813 = vmatpush.msrb.mxu2 %v1347_v3  ;;  %1934 = vmatpush.msrb.mxu0 %v1447_v51 }
 0x360   :  { %1846 = vmatpush.msra.mxu1 %v1395_v31 }
 0x361   :  { %1779 = vmatmul.f32.gmra.mxu0 %v1209_v56  ;;  %2177 = vmatmul.msk.f32.gmra.mxu3 %vm2766_vm14, %v1254_v59  ;;  %v1345_v56 = vld [vmem:[#allocation6 + $0x228] sm:$0xff] }
 0x362   :  { %v1445_v59 = vld [vmem:[#allocation6 + $0x548] sm:$0xff]  ;;  %1814 = vmatpush.msrb.mxu2 %v1345_v56  ;;  %1847 = vmatpush.msra.mxu1 %v1393_v28 }
 0x363   :  { %1935 = vmatpush.msrb.mxu0 %v1445_v59  ;;  %v1381_v56 = vld [vmem:[#allocation6 + $0x348] sm:$0xff] }
 0x364   :  { %2139 = vmatmul.msk.f32.gmra.mxu1 %vm2883_vm4, %v1207_v7  ;;  %1659 = vmatmul.f32.gmra.mxu2 %v1252_v14  ;;  %v3170_v35 = vpop.f32.mrf.mxu3  ;;  %v2079_v28 = vld [vmem:[%s3395_s5 + $0x6] ss:$8 sm:$0x3] }
 0x365   :  { %1815 = vmatpush.msrb.mxu2 %v1343_v57  ;;  %1936 = vmatpush.msrb.mxu0 %v1443_v61  ;;  %v1377_v57 = vld [vmem:[#allocation6 + $0x328] sm:$0xff] }
 0x366   :  { %1848 = vmatpush.msra.mxu1 %v1391_v25 }
 0x367   :  { %1816 = vmatpush.msrb.mxu2 %v1341_v10  ;;  %1937 = vmatpush.msrb.mxu0 %v1441_v11  ;;  %v1239_v11 = vrot.slane %v3076_v62, 1 }
 0x368   :  { %1849 = vmatpush.msra.mxu1 %v1389_v58 }
 0x369   :  { %2171 = vmatmul.msk.f32.gmra.mxu0 %vm2883_vm4, %v1207_v7  ;;  %1905 = vmatmul.f32.gmra.mxu3 %v1252_v14  ;;  %v1439_v7 = vld [vmem:[#allocation6 + $0x518] sm:$0xff]  ;;  %v1193_v14 = vrot.slane %v3086_v52, 7 }
 0x36a   :  { %1938 = vmatpush.msrb.mxu0 %v1439_v7  ;;  %1850 = vmatpush.msra.mxu1 %v1387_v42 }
 0x36b   :  { %v1199_v15 = vsel %vm237_vm5, %v1191_v29, %v1193_v14  ;;  %v1197_v30 = vsel %vm237_vm5, %v1193_v14, %v1195_v38  ;;  %v1229_v38 = vrot.slane %v3026_v4, 1  ;;  %v1241_v14 = vrot.slane %v3086_v52, 1 }
 0x36c   :  { %1539 = vmatmul.f32.gmra.mxu1 %v1205_v34  ;;  %2147 = vmatmul.msk.f32.gmra.mxu2 %vm2796_vm15, %v1250_v20  ;;  %vm2042_vm5 = vcmask 1041408  }
 0x36d   :  { %1939 = vmatpush.msrb.mxu0 %v1437_v45  ;;  %1851 = vmatpush.msra.mxu1 %v1385_v47  ;;  %v1247_v21 = vsel %vm278_vm0, %v1239_v11, %v1241_v14  ;;  %v1259_v49 = vsel %vm278_vm0, %v1243_v9, %v1229_v38 }
 0x371   :  { %1785 = vmatmul.f32.gmra.mxu0 %v1205_v34  ;;  %2179 = vmatmul.msk.f32.gmra.mxu3 %vm2796_vm15, %v1250_v20  ;;  %v3188_v34 = vpop.f32.mrf.mxu3  ;;  %v1231_v20 = vrot.slane %v3036_v60, 1 }
 0x373   :  { %v1257_v17 = vsel %vm278_vm0, %v1229_v38, %v1231_v20  ;;  %v1255_v50 = vsel %vm278_vm0, %v1231_v20, %v1233_v46  ;;  %v3293_v20 = vperm.slane %v2079_v28, 1 }
 0x374   :  { %2141 = vmatmul.msk.f32.gmra.mxu1 %vm2903_vm7, %v1203_v24  ;;  %1665 = vmatmul.f32.gmra.mxu2 %v1248_v43 }
 0x379   :  { %2173 = vmatmul.msk.f32.gmra.mxu0 %vm2903_vm7, %v1203_v24  ;;  %1911 = vmatmul.f32.gmra.mxu3 %v1248_v43  ;;  %v3201_v44 = vpop.f32.mrf.mxu3  ;;  %v1235_v24 = vrot.slane %v3056_v8, 1 }
 0x37b   :  { %v1253_v59 = vsel %vm278_vm0, %v1233_v46, %v1235_v24  ;;  %v1251_v61 = vsel %vm278_vm0, %v1235_v24, %v1237_v55 }
 0x37c   :  { %1545 = vmatmul.f32.gmra.mxu1 %v1201_v16  ;;  %2149 = vmatmul.msk.f32.gmra.mxu2 %vm2826_vm1, %v1246_v5 }
 0x381   :  { %1791 = vmatmul.f32.gmra.mxu0 %v1201_v16  ;;  %2181 = vmatmul.msk.f32.gmra.mxu3 %vm2826_vm1, %v1246_v5  ;;  %v3218_v43 = vpop.f32.mrf.mxu3  ;;  %v1373_v16 = vld [vmem:[#allocation6 + $0x308] sm:$0xff]  ;;  %v1249_v5 = vsel %vm278_vm0, %v1237_v55, %v1239_v11 }
 0x384   :  { %2143 = vmatmul.msk.f32.gmra.mxu1 %vm2923_vm6, %v1199_v15  ;;  %1671 = vmatmul.f32.gmra.mxu2 %v1244_v27 }
 0x389   :  { %2175 = vmatmul.msk.f32.gmra.mxu0 %vm2923_vm6, %v1199_v15  ;;  %1917 = vmatmul.f32.gmra.mxu3 %v1244_v27  ;;  %v3230_v32 = vpop.f32.mrf.mxu3  ;;  %v1245_v15 = vsel %vm278_vm0, %v1241_v14, %v1243_v9  ;;  %vm2037_vm0 = vcmask 1041409  }
 0x38c   :  { %1551 = vmatmul.f32.gmra.mxu1 %v1197_v30  ;;  %2151 = vmatmul.msk.f32.gmra.mxu2 %vm2864_vm3, %v1258_v36 }
 0x391   :  { %1797 = vmatmul.f32.gmra.mxu0 %v1197_v30  ;;  %2183 = vmatmul.msk.f32.gmra.mxu3 %vm2864_vm3, %v1258_v36  ;;  %v3246_v7 = vpop.f32.mrf.mxu3  ;;  %v3282_v30 = vperm.slane %v2079_v28, 0 }
 0x394   :  { %1694 = vmatmul.f32.vlgmr.msrb.gmra.mxu1 %v1257_v17  ;;  %1817 = vmatmul.f32.vlgmr.msrb.gmra.mxu2 %v2965_v2  ;;  %v1383_v2 = vld [vmem:[#allocation6 + $0x358] sm:$0xff] }
 0x395   :  { %1852 = vmatpush.msra.mxu1 %v1383_v2 }
 0x396   :  { %v3203_v18 = vpop.f32.mrf.mxu0 }
 0x397   :  { %v3205_v54 = vpop.f32.mrf.mxu2  ;;  %1853 = vmatpush.msra.mxu1 %v1381_v56 }
 0x398   :  { %v1491_v25 = vadd.f32 %v3205_v54, %v3282_v30 }
 0x399   :  { %1940 = vmatmul.f32.vlgmr.msrb.gmra.mxu0 %v1257_v17  ;;  %v3259_v22 = vpop.f32.mrf.mxu3 }
 0x39c   :  { %2153 = vmatmul.msk.f32.gmra.mxu1 %vm2766_vm14, %v1255_v50  ;;  %1820 = vmatmul.f32.gmra.mxu2 %v2972_v23  ;;  %v1379_v23 = vld [vmem:[#allocation6 + $0x338] sm:$0xff] }
 0x39d   :  { %1854 = vmatpush.msra.mxu1 %v1379_v23 }
 0x39e   :  { %v3213_v3 = vpop.f32.mrf.mxu0 }
 0x39f   :  { %v3215_v51 = vpop.f32.mrf.mxu2  ;;  %1855 = vmatpush.msra.mxu1 %v1377_v57 }
 0x3a1   :  { %2185 = vmatmul.msk.f32.gmra.mxu0 %vm2766_vm14, %v1255_v50  ;;  %v1736_v31 = vpop.f32.mrf.mxu3  ;;  %v1494_v50 = vadd.f32 %v3215_v51, %v3282_v30 }
 0x3a4   :  { %1700 = vmatmul.f32.gmra.mxu1 %v1253_v59  ;;  %1823 = vmatmul.f32.gmra.mxu2 %v2980_v13  ;;  %v1375_v13 = vld [vmem:[#allocation6 + $0x318] sm:$0xff] }
 0x3a5   :  { %1856 = vmatpush.msra.mxu1 %v1375_v13 }
 0x3a6   :  { %v3225_v41 = vpop.f32.mrf.mxu0 }
 0x3a7   :  { %v3227_v29 = vpop.f32.mrf.mxu2  ;;  %1857 = vmatpush.msra.mxu1 %v1373_v16 }
 0x3a8   :  { %v1497_v51 = vadd.f32 %v3227_v29, %v3282_v30 }
 0x3a9   :  { %1946 = vmatmul.f32.gmra.mxu0 %v1253_v59  ;;  %v1739_v1 = vpop.f32.mrf.mxu3 }
 0x3ac   :  { %2155 = vmatmul.msk.f32.gmra.mxu1 %vm2796_vm15, %v1251_v61  ;;  %1826 = vmatmul.f32.gmra.mxu2 %v2986_v63 }
 0x3ae   :  { %v3237_v6 = vpop.f32.mrf.mxu0 }
 0x3af   :  { %v3239_v10 = vpop.f32.mrf.mxu2 }
 0x3b0   :  { %v1500_v29 = vadd.f32 %v3239_v10, %v3282_v30 }
 0x3b1   :  { %2187 = vmatmul.msk.f32.gmra.mxu0 %vm2796_vm15, %v1251_v61  ;;  %v1742_v56 = vpop.f32.mrf.mxu3 }
 0x3b4   :  { %1706 = vmatmul.f32.gmra.mxu1 %v1249_v5  ;;  %1829 = vmatmul.f32.gmra.mxu2 %v2992_v48 }
 0x3b6   :  { %v3249_v63 = vpop.f32.mrf.mxu0 }
 0x3b7   :  { %v3251_v19 = vpop.f32.mrf.mxu2 }
 0x3b9   :  { %1952 = vmatmul.f32.gmra.mxu0 %v1249_v5 }
 0x3bc   :  { %2157 = vmatmul.msk.f32.gmra.mxu1 %vm2826_vm1, %v1247_v21  ;;  %1832 = vmatmul.f32.gmra.mxu2 %v2997_v26 }
 0x3be   :  { %v3261_v45 = vpop.f32.mrf.mxu0 }
 0x3bf   :  { %v3263_v48 = vpop.f32.mrf.mxu2 }
 0x3c1   :  { %2189 = vmatmul.msk.f32.gmra.mxu0 %vm2826_vm1, %v1247_v21 }
 0x3c4   :  { %1712 = vmatmul.f32.gmra.mxu1 %v1245_v15  ;;  %1835 = vmatmul.f32.gmra.mxu2 %v3002_v0 }
 0x3c6   :  { %v3271_v27 = vpop.f32.mrf.mxu0 }
 0x3c7   :  { %v3273_v26 = vpop.f32.mrf.mxu2 }
 0x3c9   :  { %1958 = vmatmul.f32.gmra.mxu0 %v1245_v15 }
 0x3cc   :  { %2159 = vmatmul.msk.f32.gmra.mxu1 %vm2864_vm3, %v1259_v49  ;;  %1838 = vmatmul.f32.gmra.mxu2 %v3010_v53  ;;  %v1737_v53 = vadd.f32 %v1736_v31, %v3293_v20 }
 0x3ce   :  { %v3287_v0 = vpop.f32.mrf.mxu0 }
 0x3cf   :  { %v3289_v36 = vpop.f32.mrf.mxu2 }
 0x3d1   :  { %v1531_v58 = vpop.f32.mrf.mxu1  ;;  %2191 = vmatmul.msk.f32.gmra.mxu0 %vm2864_vm3, %v1259_v49 }
 0x3d2   :  { %v1532_v38 = vadd.f32 %v1531_v58, %v1491_v25  ;;  %v1503_v25 = vadd.f32 %v3251_v19, %v3282_v30 }
 0x3d4   :  { %v1573_v17 = vadd.f32 %v3156_v40, %v1532_v38  ;;  %1858 = vmatmul.f32.vlgmr.msra.gmra.mxu1 %v3026_v4  ;;  %v1740_v4 = vadd.f32 %v1739_v1, %v3293_v20 }
 0x3d6   :  { %v1777_v42 = vpop.f32.mrf.mxu0  ;;  %v1614_v46 = vadd.f32 %v3203_v18, %v1573_v17 }
 0x3d7   :  { %v3301_v47 = vadd.f32 %v1777_v42, %v1737_v53  ;;  %v1654_v54 = vpop.f32.mrf.mxu2 }
 0x3d8   :  { %v3305_v2 = vadd.f32 %v1654_v54, %v1614_v46  ;;  %v1506_v46 = vadd.f32 %v3263_v48, %v3282_v30 }
 0x3d9   :  { %v1534_v39 = vpop.f32.mrf.mxu1 }
 0x3da   :  { %v1535_v24 = vadd.f32 %v1534_v39, %v1494_v50 }
 0x3dc   :  { %v1576_v40 = vadd.f32 %v3170_v35, %v1535_v24  ;;  %1861 = vmatmul.f32.gmra.mxu1 %v3036_v60  ;;  %v1743_v60 = vadd.f32 %v1742_v56, %v3293_v20  ;;  %v1745_v35 = vpop.f32.mrf.mxu3 }
 0x3de   :  { %v1780_v59 = vpop.f32.mrf.mxu0  ;;  %v1617_v18 = vadd.f32 %v3213_v3, %v1576_v40 }
 0x3df   :  { %v3311_v23 = vadd.f32 %v1780_v59, %v1740_v4  ;;  %v1657_v55 = vpop.f32.mrf.mxu2  ;;  %v1509_v4 = vadd.f32 %v3273_v26, %v3282_v30 }
 0x3e0   :  { %v3315_v57 = vadd.f32 %v1657_v55, %v1617_v18 }
 0x3e1   :  { %v1537_v61 = vpop.f32.mrf.mxu1 }
 0x3e2   :  { %v1538_v13 = vadd.f32 %v1537_v61, %v1497_v51  ;;  %v1512_v51 = vadd.f32 %v3289_v36, %v3282_v30 }
 0x3e4   :  { %v1579_v11 = vadd.f32 %v3188_v34, %v1538_v13  ;;  %1864 = vmatmul.f32.gmra.mxu1 %v3046_v33  ;;  %v1746_v33 = vadd.f32 %v1745_v35, %v3293_v20  ;;  %v1748_v58 = vpop.f32.mrf.mxu3 }
 0x3e6   :  { %v1783_v16 = vpop.f32.mrf.mxu0  ;;  %v1620_v3 = vadd.f32 %v3225_v41, %v1579_v11 }
 0x3e7   :  { %v3321_v5 = vadd.f32 %v1783_v16, %v1743_v60  ;;  %v1660_v14 = vpop.f32.mrf.mxu2  ;;  %v1965_v16 = vld [vmem:[#allocation7] sm:$0xff] }
 0x3e8   :  { %v1661_v21 = vadd.f32 %v1660_v14, %v1620_v3  ;;  %v1967_v3 = vld [vmem:[#allocation7 + $0x10] sm:$0xff] }
 0x3e9   :  { %v1540_v9 = vpop.f32.mrf.mxu1 }
 0x3ea   :  { %v1541_v15 = vadd.f32 %v1540_v9, %v1500_v29 }
 0x3ec   :  { %v1582_v31 = vadd.f32 %v3201_v44, %v1541_v15  ;;  %1867 = vmatmul.f32.gmra.mxu1 %v3056_v8  ;;  %v1749_v8 = vadd.f32 %v1748_v58, %v3293_v20  ;;  %v1751_v50 = vpop.f32.mrf.mxu3  ;;  %v1969_v15 = vld [vmem:[#allocation7 + $0x20] sm:$0xff] }
 0x3ee   :  { %v1786_v34 = vpop.f32.mrf.mxu0  ;;  %v1623_v28 = vadd.f32 %v3237_v6, %v1582_v31 }
 0x3ef   :  { %v3329_v49 = vadd.f32 %v1786_v34, %v1746_v33  ;;  %v1663_v41 = vpop.f32.mrf.mxu2 }
 0x3f0   :  { %v1664_v10 = vadd.f32 %v1663_v41, %v1623_v28 }
 0x3f1   :  { %v1543_v1 = vpop.f32.mrf.mxu1 }
 0x3f2   :  { %v1544_v38 = vadd.f32 %v1543_v1, %v1503_v25 }
 0x3f4   :  { %v1585_v17 = vadd.f32 %v3218_v43, %v1544_v38  ;;  %1870 = vmatmul.f32.gmra.mxu1 %v3066_v37  ;;  %v1752_v37 = vadd.f32 %v1751_v50, %v3293_v20  ;;  %v3359_v25 = vpop.f32.mrf.mxu3  ;;  %v1977_v50 = vld [vmem:[#allocation7 + $0x60] sm:$0xff] }
 0x3f6   :  { %v1789_v44 = vpop.f32.mrf.mxu0  ;;  %v1626_v53 = vadd.f32 %v3249_v63, %v1585_v17  ;;  %v1975_v17 = vld [vmem:[#allocation7 + $0x50] sm:$0xff] }
 0x3f7   :  { %v3337_v6 = vadd.f32 %v1789_v44, %v1749_v8  ;;  %v1666_v42 = vpop.f32.mrf.mxu2 }
 0x3f8   :  { %v1667_v19 = vadd.f32 %v1666_v42, %v1626_v53 }
 0x3f9   :  { %v1546_v54 = vpop.f32.mrf.mxu1 }
 0x3fa   :  { %v1547_v39 = vadd.f32 %v1546_v54, %v1506_v46 }
 0x3fc   :  { %v1588_v24 = vadd.f32 %v3230_v32, %v1547_v39  ;;  %1873 = vmatmul.f32.gmra.mxu1 %v3076_v62  ;;  %v3363_v44 = vpop.f32.mrf.mxu3 }
 0x3fe   :  { %v1792_v43 = vpop.f32.mrf.mxu0  ;;  %v1629_v56 = vadd.f32 %v3261_v45, %v1588_v24 }
 0x3ff   :  { %v3345_v63 = vadd.f32 %v1792_v43, %v1752_v37  ;;  %v1669_v40 = vpop.f32.mrf.mxu2 }
 0x400   :  { %v1670_v48 = vadd.f32 %v1669_v40, %v1629_v56 }
 0x401   :  { %v1549_v59 = vpop.f32.mrf.mxu1 }
 0x402   :  { %v1550_v18 = vadd.f32 %v1549_v59, %v1509_v4  ;;  %v1979_v59 = vld [vmem:[#allocation7 + $0x70] sm:$0xff] }
 0x404   :  { %v1591_v55 = vadd.f32 %v3246_v7, %v1550_v18  ;;  %1876 = vmatmul.f32.gmra.mxu1 %v3086_v52  ;;  %v1900_v37 = vpop.f32.mrf.mxu3 }
 0x406   :  { %v1632_v62 = vadd.f32 %v3271_v27, %v1591_v55  ;;  %v3361_v1 = vpop.f32.mrf.mxu0 }
 0x407   :  { %v1672_v32 = vpop.f32.mrf.mxu2 }
 0x408   :  { %v1673_v45 = vadd.f32 %v1672_v32, %v1632_v62 }
 0x409   :  { %v1552_v61 = vpop.f32.mrf.mxu1 }
 0x40a   :  { %v1553_v13 = vadd.f32 %v1552_v61, %v1512_v51 }
 0x40c   :  { %v1594_v11 = vadd.f32 %v3259_v22, %v1553_v13  ;;  %1879 = vmatmul.f32.gmra.mxu1 %v3097_v12  ;;  %v1903_v51 = vpop.f32.mrf.mxu3 }
 0x40e   :  { %v1635_v26 = vadd.f32 %v3287_v0, %v1594_v11  ;;  %v1971_v0 = vld [vmem:[#allocation7 + $0x30] sm:$0xff]  ;;  %v3365_v42 = vpop.f32.mrf.mxu0 }
 0x40f   :  { %v1675_v60 = vpop.f32.mrf.mxu2 }
 0x410   :  { %v1676_v35 = vadd.f32 %v1675_v60, %v1635_v26 }
 0x411   :  { %v1695_v7 = vpop.f32.mrf.mxu1 }
 0x412   :  { %v1696_v52 = vadd.f32 %v1695_v7, %v3305_v2 }
 0x414   :  { %v1981_v30 = vmul.f32 %v1965_v16, %v1696_v52 }
 0x416   :  { %v1941_v56 = vpop.f32.mrf.mxu0 }
 0x419   :  { %v1698_v27 = vpop.f32.mrf.mxu1 }
 0x41a   :  { %v1699_v14 = vadd.f32 %v1698_v27, %v3315_v57  ;;  %v1973_v57 = vld [vmem:[#allocation7 + $0x40] sm:$0xff] }
 0x41c   :  { %v1983_v36 = vmul.f32 %v1967_v3, %v1699_v14 }
 0x41e   :  { %v1997_v29 = vadd.f32 %v1983_v36, %v1981_v30  ;;  %v1944_v13 = vpop.f32.mrf.mxu0  ;;  %v1906_v36 = vpop.f32.mrf.mxu3 }
 0x421   :  { %v1701_v9 = vpop.f32.mrf.mxu1 }
 0x422   :  { %v1702_v22 = vadd.f32 %v1701_v9, %v1661_v21 }
 0x424   :  { %v1985_v31 = vmul.f32 %v1969_v15, %v1702_v22 }
 0x426   :  { %v1998_v12 = vadd.f32 %v1997_v29, %v1985_v31  ;;  %v1947_v31 = vpop.f32.mrf.mxu0 }
 0x429   :  { %v1704_v33 = vpop.f32.mrf.mxu1 }
 0x42a   :  { %v1705_v34 = vadd.f32 %v1704_v33, %v1664_v10  ;;  %v1818_v10 = vpop.f32.mrf.mxu2 }
 0x42b   :  { %v1819_v26 = vadd.f32 %v1818_v10, %v3301_v47 }
 0x42c   :  { %v1987_v28 = vmul.f32 %v1971_v0, %v1705_v34  ;;  %v1966_v34 = vld [vmem:[#allocation7 + $0x8] sm:$0xff] }
 0x42e   :  { %v1999_v41 = vadd.f32 %v1998_v12, %v1987_v28  ;;  %v1968_v28 = vld [vmem:[#allocation7 + $0x18] sm:$0xff] }
 0x431   :  { %v1707_v2 = vpop.f32.mrf.mxu1 }
 0x432   :  { %v1708_v58 = vadd.f32 %v1707_v2, %v1667_v19  ;;  %v2000_v19 = vrot.slane %v1999_v41, 4  ;;  %v1821_v40 = vpop.f32.mrf.mxu2 }
 0x433   :  { %v1822_v14 = vadd.f32 %v1821_v40, %v3311_v23 }
 0x434   :  { %v1989_v21 = vmul.f32 %v1973_v57, %v1708_v58 }
 0x439   :  { %v1710_v38 = vpop.f32.mrf.mxu1 }
 0x43a   :  { %v1711_v8 = vadd.f32 %v1710_v38, %v1670_v48  ;;  %v2001_v48 = vadd.f32 %v2000_v19, %v1999_v41  ;;  %v1824_v7 = vpop.f32.mrf.mxu2 }
 0x43b   :  { %v1825_v23 = vadd.f32 %v1824_v7, %v3321_v5  ;;  %v1972_v5 = vld [vmem:[#allocation7 + $0x38] sm:$0xff] }
 0x43c   :  { %v1991_v53 = vmul.f32 %v1975_v17, %v1711_v8  ;;  %v2002_v62 = vrot.slane %v2001_v48, 2  ;;  %v1909_v8 = vpop.f32.mrf.mxu3 }
 0x43e   :  { %v2015_v46 = vadd.f32 %v1991_v53, %v1989_v21  ;;  %v1950_v53 = vpop.f32.mrf.mxu0 }
 0x441   :  { %v1713_v54 = vpop.f32.mrf.mxu1 }
 0x442   :  { %v1714_v39 = vadd.f32 %v1713_v54, %v1673_v45  ;;  %v2003_v45 = vadd.f32 %v2002_v62, %v2001_v48  ;;  %v1827_v0 = vpop.f32.mrf.mxu2 }
 0x444   :  { %v1993_v24 = vmul.f32 %v1977_v50, %v1714_v39  ;;  %v2004_v3 = vrot.slane %v2003_v45, 1  ;;  %v1828_v50 = vadd.f32 %v1827_v0, %v3329_v49 }
 0x446   :  { %v2016_v43 = vadd.f32 %v2015_v46, %v1993_v24  ;;  %v2005_v15 = vadd.f32 %v2004_v3, %v2003_v45  ;;  %v1970_v46 = vld [vmem:[#allocation7 + $0x28] sm:$0xff] }
 0x449   :  { %v1716_v4 = vpop.f32.mrf.mxu1 }
 0x44a   :  { %v1717_v18 = vadd.f32 %v1716_v4, %v1676_v35  ;;  %v1830_v54 = vpop.f32.mrf.mxu2  ;;  %v1953_v4 = vpop.f32.mrf.mxu0 }
 0x44c   :  { %v1995_v55 = vmul.f32 %v1979_v59, %v1717_v18 }
 0x44e   :  { %v2017_v32 = vadd.f32 %v2016_v43, %v1995_v55  ;;  %v1831_v55 = vadd.f32 %v1830_v54, %v3337_v6 }
 0x450   :  { %v2018_v61 = vrot.slane %v2017_v32, 4 }
 0x451   :  { %v1859_v11 = vpop.f32.mrf.mxu1 }
 0x452   :  { %v2019_v60 = vadd.f32 %v2018_v61, %v2017_v32  ;;  %v1860_v16 = vadd.f32 %v1859_v11, %v1819_v26  ;;  %v1833_v48 = vpop.f32.mrf.mxu2 }
 0x453   :  { %v1834_v61 = vadd.f32 %v1833_v48, %v3345_v63 }
 0x454   :  { %v2020_v52 = vrot.slane %v2019_v60, 2  ;;  %v1901_v30 = vadd.f32 %v1900_v37, %v1860_v16  ;;  %v1974_v16 = vld [vmem:[#allocation7 + $0x48] sm:$0xff] }
 0x456   :  { %v2021_v27 = vadd.f32 %v2020_v52, %v2019_v60  ;;  %v1942_v12 = vadd.f32 %v1941_v56, %v1901_v30  ;;  %v1912_v56 = vpop.f32.mrf.mxu3  ;;  %v1755_v60 = vadd.f32 %v3359_v25, %v3293_v20 }
 0x458   :  { %v2022_v35 = vrot.slane %v2021_v27, 1  ;;  %v1982_v2 = vmul.f32 %v1966_v34, %v1942_v12  ;;  %v1796_v3 = vadd.f32 %v3361_v1, %v1755_v60  ;;  %v1978_v34 = vld [vmem:[#allocation7 + $0x68] sm:$0xff] }
 0x459   :  { %v1862_v29 = vpop.f32.mrf.mxu1 }
 0x45a   :  { %v1863_v9 = vadd.f32 %v1862_v29, %v1822_v14  ;;  %v2023_v22 = vadd.f32 %v2022_v35, %v2021_v27  ;;  %v1836_v45 = vpop.f32.mrf.mxu2  ;;  %v1976_v27 = vld [vmem:[#allocation7 + $0x58] sm:$0xff] }
 0x45b   :  { %v1837_v14 = vadd.f32 %v1836_v45, %v1796_v3 }
 0x45c   :  { %v1904_v47 = vadd.f32 %v1903_v51, %v1863_v9  ;;  %v3370_v33 = vsel %vm2037_vm0, %v2023_v22, %v2005_v15  ;;  %v1758_v22 = vadd.f32 %v3363_v44, %v3293_v20 }
 0x45e   :  { %v1945_v41 = vadd.f32 %v1944_v13, %v1904_v47  ;;  %v1915_v51 = vpop.f32.mrf.mxu3  ;;  %v1956_v13 = vpop.f32.mrf.mxu0  ;;  %v1799_v12 = vadd.f32 %v3365_v42, %v1758_v22 }
 0x460   :  { %v1984_v58 = vmul.f32 %v1968_v28, %v1945_v41 }
 0x461   :  { %v1865_v57 = vpop.f32.mrf.mxu1 }
 0x462   :  { %v2006_v38 = vadd.f32 %v1984_v58, %v1982_v2  ;;  %v1866_v17 = vadd.f32 %v1865_v57, %v1825_v23  ;;  %v1839_v25 = vpop.f32.mrf.mxu2 }
 0x463   :  { %v1840_v47 = vadd.f32 %v1839_v25, %v1799_v12 }
 0x464   :  { %v1907_v21 = vadd.f32 %v1906_v36, %v1866_v17 }
 0x466   :  { %v1948_v10 = vadd.f32 %v1947_v31, %v1907_v21  ;;  %v1918_v36 = vpop.f32.mrf.mxu3  ;;  %v1959_v15 = vpop.f32.mrf.mxu0 }
 0x468   :  { %v1986_v39 = vmul.f32 %v1970_v46, %v1948_v10 }
 0x469   :  { %v1868_v24 = vpop.f32.mrf.mxu1 }
 0x46a   :  { %v2007_v37 = vadd.f32 %v2006_v38, %v1986_v39  ;;  %v1869_v19 = vadd.f32 %v1868_v24, %v1828_v50  ;;  %v1980_v38 = vld [vmem:[#allocation7 + $0x78] sm:$0xff] }
 0x46c   :  { %v1910_v43 = vadd.f32 %v1909_v8, %v1869_v19 }
 0x46e   :  { %v1951_v40 = vadd.f32 %v1950_v53, %v1910_v43  ;;  %v1921_v23 = vpop.f32.mrf.mxu3  ;;  %v1962_v57 = vpop.f32.mrf.mxu0 }
 0x470   :  { %v1988_v59 = vmul.f32 %v1972_v5, %v1951_v40 }
 0x471   :  { %v1871_v18 = vpop.f32.mrf.mxu1 }
 0x472   :  { %v2008_v62 = vadd.f32 %v2007_v37, %v1988_v59  ;;  %v1872_v32 = vadd.f32 %v1871_v18, %v1831_v55 }
 0x474   :  { %v1913_v49 = vadd.f32 %v1912_v56, %v1872_v32  ;;  %v2009_v28 = vrot.slane %v2008_v62, 4  ;;  %v2043_v56 = vsel %vm2042_vm5, %v3370_v33, 0.0 }
 0x476   :  { %v1954_v7 = vadd.f32 %v1953_v4, %v1913_v49  ;;  %v2010_v17 = vadd.f32 %v2009_v28, %v2008_v62  ;;  %v220_v4 = vld [vmem:[%s3395_s5 + $0x7] ss:$0 sm:$0xff] }
 0x478   :  { %v1990_v30 = vmul.f32 %v1974_v16, %v1954_v7  ;;  %v2011_v44 = vrot.slane %v2010_v17, 2 }
 0x479   :  { %v1874_v11 = vpop.f32.mrf.mxu1 }
 0x47a   :  { %v1875_v26 = vadd.f32 %v1874_v11, %v1834_v61  ;;  %v2012_v42 = vadd.f32 %v2011_v44, %v2010_v17 }
 0x47c   :  { %v1916_v52 = vadd.f32 %v1915_v51, %v1875_v26  ;;  %v2013_v50 = vrot.slane %v2012_v42, 1 }
 0x47e   :  { %v1957_v6 = vadd.f32 %v1956_v13, %v1916_v52  ;;  %v2014_v37 = vadd.f32 %v2013_v50, %v2012_v42 }
 0x480   :  { %v1992_v35 = vmul.f32 %v1976_v27, %v1957_v6 }
 0x481   :  { %v1877_v63 = vpop.f32.mrf.mxu1 }
 0x482   :  { %v2024_v29 = vadd.f32 %v1992_v35, %v1990_v30  ;;  %v1878_v9 = vadd.f32 %v1877_v63, %v1837_v14 }
 0x484   :  { %v1919_v31 = vadd.f32 %v1918_v36, %v1878_v9 }
 0x486   :  { %v1960_v0 = vadd.f32 %v1959_v15, %v1919_v31 }
 0x488   :  { %v1994_v2 = vmul.f32 %v1978_v34, %v1960_v0 }
 0x489   :  { %v1880_v1 = vpop.f32.mrf.mxu1 }
 0x48a   :  { %v1881_v41 = vadd.f32 %v1880_v1, %v1840_v47  ;;  %v2025_v21 = vadd.f32 %v2024_v29, %v1994_v2 }
 0x48c   :  { %v1922_v58 = vadd.f32 %v1921_v23, %v1881_v41 }
 0x48e   :  { %v1963_v8 = vadd.f32 %v1962_v57, %v1922_v58 }
 0x490   :  { %v1996_v53 = vmul.f32 %v1980_v38, %v1963_v8 }
 0x492   :  { %v2026_v20 = vadd.f32 %v2025_v21, %v1996_v53 }
 0x494   :  { %v2027_v46 = vrot.slane %v2026_v20, 4 }
 0x496   :  { %v2028_v10 = vadd.f32 %v2027_v46, %v2026_v20 }
 0x498   :  { %v2029_v54 = vrot.slane %v2028_v10, 2 }
 0x49a   :  { %v2030_v39 = vadd.f32 %v2029_v54, %v2028_v10 }
 0x49c   :  { %v2031_v24 = vrot.slane %v2030_v39, 1 }
 0x49e   :  { %v2032_v19 = vadd.f32 %v2031_v24, %v2030_v39 }
 0x4a0   :  { %v2039_v43 = vsel %vm2037_vm0, %v2032_v19, %v2014_v37 }
 0x4a1   :  { %v2044_v5 = vsel %vm2042_vm5, %v2039_v43, 0.0 }
 0x4a2   :  { %v2045_v40 = vadd.f32 %v2044_v5, %v2043_v56 }
 0x4a4   :  { %2046 = vadd.xlane.f32.xlu0 %v2045_v40 }
 0x517   :  { %v2047_v59 = vpop.xlane.xlu0 %2046 }
 0x518   :  { %v2048_v48 = vadd.f32 %v2047_v59, %v220_v4 }
 0x51a   :  { %v2192_v18 = vmul.f32 -1.442695, %v2048_v48 }
 0x51c   :  { %2209 = vpow2.f32 %v2192_v18 }
 0x522   :  { %v2210_v55 = vpop.eup %2209 }
 0x523   :  { %v2052_v62 = vadd.f32 1.0, %v2210_v55 }
 0x525   :  { %2211 = vrcp.f32 %v2052_v62  ;;  %v2064_v49 = vand.u32 2147483648, %v2052_v62  ;;  %v2062_v33 = vand.u32 2147483647, %v2052_v62  ;;  %vm2058_vm9 = vweird.f32 %v2052_v62 }
 0x527   :  { %v2065_v26 = vor.u32 1.1754944e-38, %v2064_v49  ;;  %vm2063_vm12 = vcmp.eq.f32.partialorder %v2062_v33, 8.507059e+37 }
 0x52b   :  { %v2212_v32 = vpop.eup %2211 }
 0x52c   :  { %v2054_v51 = vmul.f32 %v2212_v32, %v2052_v62  ;;  %vm2059_vm8 = vweird.f32 %v2212_v32 }
 0x52d   :  { %vm2060_vm11 = vmor %vm2058_vm9, %vm2059_vm8 }
 0x52e   :  { %v2055_v61 = vsub.f32 1.0, %v2054_v51 }
 0x530   :  { %v2056_v13 = vmul.f32 %v2212_v32, %v2055_v61 }
 0x532   :  { %v2057_v11 = vadd.f32 %v2212_v32, %v2056_v13 }
 0x534   :  { %v2061_v45 = vsel %vm2060_vm11, %v2212_v32, %v2057_v11 }
 0x535   :  { %v2066_v60 = vsel %vm2063_vm12, %v2065_v26, %v2061_v45 }
 0x536   :  { %2069 = vst.msk [vmem:[%s3397_s7] sm:$0x3] %vm2068_vm10, %v2066_v60 }
 0x537   :  { %2074 = vsyncpa [#allocation3], 1 }
 0x538   :  { %2075 = vsyncpa [#allocation5], 1 }
 0x539   :  { %2076 = vsyncpa [#allocation8], 1 }

</bundles_post_ra>
